<compile_context>
chip_gen: v5e
topology: v5e:2x2
jax: 0.10.0
libtpu: 0.0.40
codegen_flags: <defaults>
</compile_context>

<pallas_src>
import functools

import jax
import jax.numpy as jnp
from jax.experimental import pallas as pl
from jax.experimental.pallas import tpu as pltpu


def head_kernel(feat_ref, w0_ref, w1_ref, w2_ref, bn_ref, b2_ref,
                za_ref, zb_ref, *, n_batch):
    """Projection head (Linear -> BN -> ReLU, x2, Linear+bias) for BOTH views stacked
    on the batch axis, followed by the per-view column normalization
    (z - z.mean(0)) / z.std(0).  Emits the two normalized embeddings in f32."""
    n = n_batch

    w0 = w0_ref[...]              # (C, 512)   bf16 (backbone linear folded in)
    w1 = w1_ref[...]              # (512, 512) bf16
    w2 = w2_ref[...]              # (512, D)   bf16
    bn = bn_ref[...]              # (4, 512)   f32: [g0; b0; g1; b1]
    g0, b0 = bn[0:1, :], bn[1:2, :]
    g1, b1 = bn[2:3, :], bn[3:4, :]
    b2 = b2_ref[...]              # (1, D)     f32
    feat = feat_ref[...]          # (2N, C)    bf16, both views stacked

    def bn_relu(h, gamma, beta, eps=1e-5):
        # nn.BatchNorm1d in training mode: per-view batch mean / *biased* batch var.
        f = h.shape[-1]
        h2 = h.reshape(2, n, f)                         # N % 8 == 0 -> aligned reshape
        mean = jnp.mean(h2, axis=1, keepdims=True)
        mean_sq = jnp.mean(h2 * h2, axis=1, keepdims=True)
        var = jnp.maximum(mean_sq - mean * mean, 0.0)   # single-pass variance
        hn = (h2 - mean) * jax.lax.rsqrt(var + eps)
        out = jnp.maximum(hn * gamma + beta, 0.0)
        # bf16 only as the next MXU operand; all stats/elementwise math stays f32.
        return out.reshape(2 * n, f).astype(jnp.bfloat16)

    h = jnp.dot(feat, w0, preferred_element_type=jnp.float32)        # (2N, 512)
    h = bn_relu(h, g0, b0)
    h = jnp.dot(h, w1, preferred_element_type=jnp.float32)           # (2N, 512)
    h = bn_relu(h, g1, b1)
    z = jnp.dot(h, w2, preferred_element_type=jnp.float32) + b2      # (2N, D) f32

    d = z.shape[-1]
    nf = float(n)
    z2 = z.reshape(2, n, d)
    mu = jnp.mean(z2, axis=1, keepdims=True)
    mu_sq = jnp.mean(z2 * z2, axis=1, keepdims=True)
    var = jnp.maximum(mu_sq - mu * mu, 0.0) * (nf / (nf - 1.0))      # unbiased (N-1)
    # NOTE: no epsilon, matching torch `z.std(0)` (inf on a zero-variance dim).
    zn = (z2 - mu) * jax.lax.rsqrt(var)

    za_ref[...] = zn[0]                                              # (N, D) f32
    zb_ref[...] = zn[1]                                              # (N, D) f32


def corr_loss_kernel(za_ref, zb_ref, out_ref, acc_ref,
                     *, lambda_param, n_batch, tile_d):
    """One (tile_d, tile_d) tile of c = za^T @ zb / N and its loss contribution.

    loss = lambda * sum(c^2) over ALL entries
         + sum over the diagonal of ((1 - lambda) * c_dd^2 - 2 * c_dd + 1)

    The diagonal of a diagonal tile is the column-wise sum of za*zb / N, so no
    (D, D) identity mask, iota, or cross-lane gather is needed."""
    i = pl.program_id(0)
    j = pl.program_id(1)
    inv_n = 1.0 / float(n_batch)

    @pl.when(j == 0)
    def _():
        acc_ref[0] = 0.0

    za = za_ref[...]                                     # (N, tile_d) f32
    zb = zb_ref[...]                                     # (N, tile_d) f32
    c = jnp.einsum('nd,ne->de', za, zb,
                   preferred_element_type=jnp.float32) * inv_n        # (tile_d, tile_d)
    acc_ref[0] += lambda_param * jnp.sum(c * c)

    @pl.when(i == j)
    def _():
        diag = jnp.sum(za * zb, axis=0, keepdims=True) * inv_n        # (1, tile_d) = diag(c)
        acc_ref[0] += (jnp.sum((1.0 - lambda_param) * diag * diag - 2.0 * diag)
                       + float(tile_d))

    @pl.when(j == pl.num_programs(1) - 1)
    def _():
        out_ref[0, 0] = acc_ref[0]


def barlow_twins_loss(x_a, x_b, params, lambda_param, *, tile_d=None):
    """x_a, x_b: NCHW float32 images. Returns the scalar Barlow Twins loss."""
    # TODO(synk): real Backbone (e.g. ResNet) is replaced by global-avg-pool plus a
    # bias-free linear projection; that linear is folded into the first (bias-free)
    # head linear below ((feat @ wb) @ w0 == feat @ (wb @ w0), no BN/ReLU in between).
    # With this placeholder the first matmul has tiny K (= in_channels); with a real
    # backbone (C >= 512) the MXU K dimension is properly occupied.
    feat_a = jnp.mean(x_a, axis=(2, 3))
    feat_b = jnp.mean(x_b, axis=(2, 3))
    n = feat_a.shape[0]
    assert n % 8 == 0, "per-view batch must be a multiple of 8 (sublane alignment)"

    # Matmul operands enter the kernel as bf16 (half the DMA/VMEM); stats stay f32.
    feat = jnp.concatenate([feat_a, feat_b], axis=0).astype(jnp.bfloat16)   # (2N, C)
    w0 = (params['wb'] @ params['w0']).astype(jnp.bfloat16)                 # (C, 512)
    w1 = params['w1'].astype(jnp.bfloat16)                                  # (512, 512)
    w2 = params['w2'].astype(jnp.bfloat16)                                  # (512, D)
    bn = jnp.concatenate([params['g0'], params['b0'],
                          params['g1'], params['b1']], axis=0)              # (4, 512) f32
    b2 = params['b2']                                                       # (1, D)   f32
    d = w2.shape[-1]

    vmem = pl.BlockSpec(memory_space=pltpu.MemorySpace.VMEM)

    # Kernel 1: projection head + per-view column normalization (single block).
    za, zb = pl.pallas_call(
        functools.partial(head_kernel, n_batch=n),
        out_shape=(jax.ShapeDtypeStruct((n, d), jnp.float32),
                   jax.ShapeDtypeStruct((n, d), jnp.float32)),
        in_specs=[vmem] * 6,
        out_specs=(vmem, vmem),
    )(feat, w0, w1, w2, bn, b2)

    # Kernel 2: correlation + loss, tiled over (D_i, D_j) output tiles of c so the
    # dense (D, D) matrix is never materialized (matters for D up to 8192 / 64 MiB VMEM).
    if tile_d is None:
        tile_d = 256 if d % 256 == 0 else 128   # TODO(synk): prefer 128 on v5e (4x128 MXU)
    assert d % tile_d == 0
    gd = d // tile_d

    partials = pl.pallas_call(
        functools.partial(corr_loss_kernel, lambda_param=float(lambda_param),
                          n_batch=n, tile_d=tile_d),
        out_shape=jax.ShapeDtypeStruct((gd, 1), jnp.float32),
        grid_spec=pltpu.PrefetchScalarGridSpec(
            num_scalar_prefetch=0,
            grid=(gd, gd),
            in_specs=[pl.BlockSpec((n, tile_d), lambda i, j: (0, i)),
                      pl.BlockSpec((n, tile_d), lambda i, j: (0, j))],
            out_specs=pl.BlockSpec((1, 1), lambda i, j: (i, 0),
                                   memory_space=pltpu.MemorySpace.SMEM),
            scratch_shapes=[pltpu.SMEM((1,), jnp.float32)]),
        compiler_params=pltpu.CompilerParams(
            dimension_semantics=("parallel", "arbitrary")),
    )(za, zb)

    return jnp.sum(partials)


def init_params(key, in_channels, output_size, head_size):
    """Deterministic synthetic parameters matching the module's shapes."""
    ks = jax.random.split(key, 4)
    scale = 0.05
    params = {
        # synthetic backbone linear: (C -> output_size)
        'wb': scale * jax.random.normal(ks[0], (in_channels, output_size), jnp.float32),
        # head: Linear(output_size, 512, bias=False)
        'w0': scale * jax.random.normal(ks[1], (output_size, 512), jnp.float32),
        'g0': jnp.ones((1, 512), jnp.float32),     # BatchNorm1d weight (default init)
        'b0': jnp.zeros((1, 512), jnp.float32),    # BatchNorm1d bias
        # Linear(512, 512, bias=False)
        'w1': scale * jax.random.normal(ks[2], (512, 512), jnp.float32),
        'g1': jnp.ones((1, 512), jnp.float32),
        'b1': jnp.zeros((1, 512), jnp.float32),
        # Linear(512, head_size) with bias
        'w2': scale * jax.random.normal(ks[3], (512, head_size), jnp.float32),
        'b2': jnp.zeros((1, head_size), jnp.float32),
    }
    return params


if __name__ == "__main__":
    key = jax.random.PRNGKey(0)
    k_xa, k_xb, k_p = jax.random.split(key, 3)

    # Small shapes: batch=8 (multiple of 8), channels=4, spatial=16x16;
    # backbone.output_size=32, head_size=128, lambda_param=5e-3.
    N, C, H, W = 8, 4, 16, 16
    OUTPUT_SIZE = 32
    HEAD_SIZE = 128
    LAMBDA = 5e-3

    x_a = jax.random.normal(k_xa, (N, C, H, W), jnp.float32)
    x_b = jax.random.normal(k_xb, (N, C, H, W), jnp.float32)
    params = init_params(k_p, C, OUTPUT_SIZE, HEAD_SIZE)

    loss = barlow_twins_loss(x_a, x_b, params, LAMBDA)
    jax.block_until_ready(loss)
    print("KERNEL_OK")
</pallas_src>

<mosaic_0001>
module attributes {stable_mosaic.version = 11 : i64} {
  func.func @head_kernel(%arg0: memref<16x4xbf16, #tpu.memory_space<vmem>>, %arg1: memref<4x512xbf16, #tpu.memory_space<vmem>>, %arg2: memref<512x512xbf16, #tpu.memory_space<vmem>>, %arg3: memref<512x128xbf16, #tpu.memory_space<vmem>>, %arg4: memref<4x512xf32, #tpu.memory_space<vmem>>, %arg5: memref<1x128xf32, #tpu.memory_space<vmem>>, %arg6: memref<8x128xf32, #tpu.memory_space<vmem>>, %arg7: memref<8x128xf32, #tpu.memory_space<vmem>>) attributes {dimension_semantics = [], scalar_prefetch = 0 : i64, scratch_operands = 0 : i64, tpu.core_type = #tpu.core_type<tc>} {
    %c0 = arith.constant 0 : index
    %c0_0 = arith.constant 0 : index
    %0 = vector.load %arg1[%c0, %c0_0] : memref<4x512xbf16, #tpu.memory_space<vmem>>, vector<4x512xbf16>
    %c0_1 = arith.constant 0 : index
    %c0_2 = arith.constant 0 : index
    %1 = vector.load %arg2[%c0_1, %c0_2] : memref<512x512xbf16, #tpu.memory_space<vmem>>, vector<512x512xbf16>
    %c0_3 = arith.constant 0 : index
    %c0_4 = arith.constant 0 : index
    %2 = vector.load %arg3[%c0_3, %c0_4] : memref<512x128xbf16, #tpu.memory_space<vmem>>, vector<512x128xbf16>
    %c0_5 = arith.constant 0 : index
    %c0_6 = arith.constant 0 : index
    %3 = vector.load %arg4[%c0_5, %c0_6] : memref<4x512xf32, #tpu.memory_space<vmem>>, vector<4x512xf32>
    %4 = vector.extract_strided_slice %3 {offsets = [0, 0], sizes = [1, 512], strides = [1, 1]} : vector<4x512xf32> to vector<1x512xf32>
    %5 = vector.extract_strided_slice %3 {offsets = [1, 0], sizes = [1, 512], strides = [1, 1]} : vector<4x512xf32> to vector<1x512xf32>
    %6 = vector.extract_strided_slice %3 {offsets = [2, 0], sizes = [1, 512], strides = [1, 1]} : vector<4x512xf32> to vector<1x512xf32>
    %7 = vector.extract_strided_slice %3 {offsets = [3, 0], sizes = [1, 512], strides = [1, 1]} : vector<4x512xf32> to vector<1x512xf32>
    %c0_7 = arith.constant 0 : index
    %c0_8 = arith.constant 0 : index
    %8 = vector.load %arg5[%c0_7, %c0_8] : memref<1x128xf32, #tpu.memory_space<vmem>>, vector<1x128xf32>
    %c0_9 = arith.constant 0 : index
    %c0_10 = arith.constant 0 : index
    %9 = vector.load %arg0[%c0_9, %c0_10] : memref<16x4xbf16, #tpu.memory_space<vmem>>, vector<16x4xbf16>
    %cst = arith.constant dense<0.000000e+00> : vector<16x512xf32>
    %10 = tpu.matmul %9, %0, %cst {dimension_numbers = #tpu.dot_dimension_numbers<[1], [0], [0], [1], [0, 0, 1, 1], [], []>} : vector<16x4xbf16>, vector<4x512xbf16>, vector<16x512xf32> -> vector<16x512xf32>
    %11 = vector.shape_cast %10 : vector<16x512xf32> to vector<2x8x512xf32>
    %cst_11 = arith.constant dense<0.000000e+00> : vector<2x512xf32>
    %12 = vector.multi_reduction <add>, %11, %cst_11 [1] : vector<2x8x512xf32> to vector<2x512xf32>
    %13 = vector.shape_cast %12 : vector<2x512xf32> to vector<2x1x512xf32>
    %cst_12 = arith.constant 8.000000e+00 : f32
    %14 = vector.broadcast %cst_12 : f32 to vector<2x1x512xf32>
    %15 = arith.divf %13, %14 : vector<2x1x512xf32>
    %16 = arith.mulf %11, %11 : vector<2x8x512xf32>
    %cst_13 = arith.constant dense<0.000000e+00> : vector<2x512xf32>
    %17 = vector.multi_reduction <add>, %16, %cst_13 [1] : vector<2x8x512xf32> to vector<2x512xf32>
    %18 = vector.shape_cast %17 : vector<2x512xf32> to vector<2x1x512xf32>
    %cst_14 = arith.constant 8.000000e+00 : f32
    %19 = vector.broadcast %cst_14 : f32 to vector<2x1x512xf32>
    %20 = arith.divf %18, %19 : vector<2x1x512xf32>
    %21 = arith.mulf %15, %15 : vector<2x1x512xf32>
    %22 = arith.subf %20, %21 : vector<2x1x512xf32>
    %cst_15 = arith.constant 0.000000e+00 : f32
    %23 = vector.broadcast %cst_15 : f32 to vector<2x1x512xf32>
    %24 = arith.maximumf %22, %23 : vector<2x1x512xf32>
    %25 = vector.broadcast %15 : vector<2x1x512xf32> to vector<2x8x512xf32>
    %26 = arith.subf %11, %25 : vector<2x8x512xf32>
    %cst_16 = arith.constant 9.99999974E-6 : f32
    %27 = vector.broadcast %cst_16 : f32 to vector<2x1x512xf32>
    %28 = arith.addf %24, %27 : vector<2x1x512xf32>
    %29 = math.rsqrt %28 : vector<2x1x512xf32>
    %30 = vector.broadcast %29 : vector<2x1x512xf32> to vector<2x8x512xf32>
    %31 = arith.mulf %26, %30 : vector<2x8x512xf32>
    %32 = vector.shape_cast %4 : vector<1x512xf32> to vector<1x1x512xf32>
    %33 = vector.broadcast %32 : vector<1x1x512xf32> to vector<2x8x512xf32>
    %34 = arith.mulf %31, %33 : vector<2x8x512xf32>
    %35 = vector.shape_cast %5 : vector<1x512xf32> to vector<1x1x512xf32>
    %36 = vector.broadcast %35 : vector<1x1x512xf32> to vector<2x8x512xf32>
    %37 = arith.addf %34, %36 : vector<2x8x512xf32>
    %cst_17 = arith.constant 0.000000e+00 : f32
    %38 = vector.broadcast %cst_17 : f32 to vector<2x8x512xf32>
    %39 = arith.maximumf %37, %38 : vector<2x8x512xf32>
    %40 = vector.shape_cast %39 : vector<2x8x512xf32> to vector<16x512xf32>
    %41 = arith.truncf %40 : vector<16x512xf32> to vector<16x512xbf16>
    %cst_18 = arith.constant dense<0.000000e+00> : vector<16x512xf32>
    %42 = tpu.matmul %41, %1, %cst_18 {dimension_numbers = #tpu.dot_dimension_numbers<[1], [0], [0], [1], [0, 0, 1, 1], [], []>} : vector<16x512xbf16>, vector<512x512xbf16>, vector<16x512xf32> -> vector<16x512xf32>
    %43 = vector.shape_cast %42 : vector<16x512xf32> to vector<2x8x512xf32>
    %cst_19 = arith.constant dense<0.000000e+00> : vector<2x512xf32>
    %44 = vector.multi_reduction <add>, %43, %cst_19 [1] : vector<2x8x512xf32> to vector<2x512xf32>
    %45 = vector.shape_cast %44 : vector<2x512xf32> to vector<2x1x512xf32>
    %cst_20 = arith.constant 8.000000e+00 : f32
    %46 = vector.broadcast %cst_20 : f32 to vector<2x1x512xf32>
    %47 = arith.divf %45, %46 : vector<2x1x512xf32>
    %48 = arith.mulf %43, %43 : vector<2x8x512xf32>
    %cst_21 = arith.constant dense<0.000000e+00> : vector<2x512xf32>
    %49 = vector.multi_reduction <add>, %48, %cst_21 [1] : vector<2x8x512xf32> to vector<2x512xf32>
    %50 = vector.shape_cast %49 : vector<2x512xf32> to vector<2x1x512xf32>
    %cst_22 = arith.constant 8.000000e+00 : f32
    %51 = vector.broadcast %cst_22 : f32 to vector<2x1x512xf32>
    %52 = arith.divf %50, %51 : vector<2x1x512xf32>
    %53 = arith.mulf %47, %47 : vector<2x1x512xf32>
    %54 = arith.subf %52, %53 : vector<2x1x512xf32>
    %cst_23 = arith.constant 0.000000e+00 : f32
    %55 = vector.broadcast %cst_23 : f32 to vector<2x1x512xf32>
    %56 = arith.maximumf %54, %55 : vector<2x1x512xf32>
    %57 = vector.broadcast %47 : vector<2x1x512xf32> to vector<2x8x512xf32>
    %58 = arith.subf %43, %57 : vector<2x8x512xf32>
    %cst_24 = arith.constant 9.99999974E-6 : f32
    %59 = vector.broadcast %cst_24 : f32 to vector<2x1x512xf32>
    %60 = arith.addf %56, %59 : vector<2x1x512xf32>
    %61 = math.rsqrt %60 : vector<2x1x512xf32>
    %62 = vector.broadcast %61 : vector<2x1x512xf32> to vector<2x8x512xf32>
    %63 = arith.mulf %58, %62 : vector<2x8x512xf32>
    %64 = vector.shape_cast %6 : vector<1x512xf32> to vector<1x1x512xf32>
    %65 = vector.broadcast %64 : vector<1x1x512xf32> to vector<2x8x512xf32>
    %66 = arith.mulf %63, %65 : vector<2x8x512xf32>
    %67 = vector.shape_cast %7 : vector<1x512xf32> to vector<1x1x512xf32>
    %68 = vector.broadcast %67 : vector<1x1x512xf32> to vector<2x8x512xf32>
    %69 = arith.addf %66, %68 : vector<2x8x512xf32>
    %cst_25 = arith.constant 0.000000e+00 : f32
    %70 = vector.broadcast %cst_25 : f32 to vector<2x8x512xf32>
    %71 = arith.maximumf %69, %70 : vector<2x8x512xf32>
    %72 = vector.shape_cast %71 : vector<2x8x512xf32> to vector<16x512xf32>
    %73 = arith.truncf %72 : vector<16x512xf32> to vector<16x512xbf16>
    %cst_26 = arith.constant dense<0.000000e+00> : vector<16x128xf32>
    %74 = tpu.matmul %73, %2, %cst_26 {dimension_numbers = #tpu.dot_dimension_numbers<[1], [0], [0], [1], [0, 0, 1, 1], [], []>} : vector<16x512xbf16>, vector<512x128xbf16>, vector<16x128xf32> -> vector<16x128xf32>
    %75 = vector.broadcast %8 : vector<1x128xf32> to vector<16x128xf32>
    %76 = arith.addf %74, %75 : vector<16x128xf32>
    %77 = vector.shape_cast %76 : vector<16x128xf32> to vector<2x8x128xf32>
    %cst_27 = arith.constant dense<0.000000e+00> : vector<2x128xf32>
    %78 = vector.multi_reduction <add>, %77, %cst_27 [1] : vector<2x8x128xf32> to vector<2x128xf32>
    %79 = vector.shape_cast %78 : vector<2x128xf32> to vector<2x1x128xf32>
    %cst_28 = arith.constant 8.000000e+00 : f32
    %80 = vector.broadcast %cst_28 : f32 to vector<2x1x128xf32>
    %81 = arith.divf %79, %80 : vector<2x1x128xf32>
    %82 = arith.mulf %77, %77 : vector<2x8x128xf32>
    %cst_29 = arith.constant dense<0.000000e+00> : vector<2x128xf32>
    %83 = vector.multi_reduction <add>, %82, %cst_29 [1] : vector<2x8x128xf32> to vector<2x128xf32>
    %84 = vector.shape_cast %83 : vector<2x128xf32> to vector<2x1x128xf32>
    %cst_30 = arith.constant 8.000000e+00 : f32
    %85 = vector.broadcast %cst_30 : f32 to vector<2x1x128xf32>
    %86 = arith.divf %84, %85 : vector<2x1x128xf32>
    %87 = arith.mulf %81, %81 : vector<2x1x128xf32>
    %88 = arith.subf %86, %87 : vector<2x1x128xf32>
    %cst_31 = arith.constant 0.000000e+00 : f32
    %89 = vector.broadcast %cst_31 : f32 to vector<2x1x128xf32>
    %90 = arith.maximumf %88, %89 : vector<2x1x128xf32>
    %cst_32 = arith.constant 1.14285719 : f32
    %91 = vector.broadcast %cst_32 : f32 to vector<2x1x128xf32>
    %92 = arith.mulf %90, %91 : vector<2x1x128xf32>
    %93 = vector.broadcast %81 : vector<2x1x128xf32> to vector<2x8x128xf32>
    %94 = arith.subf %77, %93 : vector<2x8x128xf32>
    %95 = math.rsqrt %92 : vector<2x1x128xf32>
    %96 = vector.broadcast %95 : vector<2x1x128xf32> to vector<2x8x128xf32>
    %97 = arith.mulf %94, %96 : vector<2x8x128xf32>
    %98 = vector.extract_strided_slice %97 {offsets = [0, 0, 0], sizes = [1, 8, 128], strides = [1, 1, 1]} : vector<2x8x128xf32> to vector<1x8x128xf32>
    %99 = vector.shape_cast %98 : vector<1x8x128xf32> to vector<8x128xf32>
    %c0_33 = arith.constant 0 : index
    %c0_34 = arith.constant 0 : index
    %100 = vector.load %arg6[%c0_33, %c0_34] : memref<8x128xf32, #tpu.memory_space<vmem>>, vector<8x128xf32>
    tpu.vector_store %arg6[%c0_33, %c0_34], %99 {strides = array<i32>} : memref<8x128xf32, #tpu.memory_space<vmem>>, vector<8x128xf32>,
    %101 = vector.extract_strided_slice %97 {offsets = [1, 0, 0], sizes = [1, 8, 128], strides = [1, 1, 1]} : vector<2x8x128xf32> to vector<1x8x128xf32>
    %102 = vector.shape_cast %101 : vector<1x8x128xf32> to vector<8x128xf32>
    %c0_35 = arith.constant 0 : index
    %c0_36 = arith.constant 0 : index
    %103 = vector.load %arg7[%c0_35, %c0_36] : memref<8x128xf32, #tpu.memory_space<vmem>>, vector<8x128xf32>
    tpu.vector_store %arg7[%c0_35, %c0_36], %102 {strides = array<i32>} : memref<8x128xf32, #tpu.memory_space<vmem>>, vector<8x128xf32>,
    return
  }
}

</mosaic_0001>

<bundles_post_ra>
// kernel: tpu_custom_call.1
= control target key start
LH: loop header
LB: loop body
LE: loop exit
PB: predicated region body
PF: predicated region fallthrough
CT: control target
= control target key end

     0   :  { %13 = vsyncpa [#allocation3], 0  ;;  %s3872_s0 = inlined_call_operand.vmem [shape: bf16[16,4], index: 0, kind: input, shape index: {}]   ;;  %s3873_s1 = inlined_call_operand.vmem [shape: bf16[4,512], index: 1, kind: input, shape index: {}]   ;;  %s3874_s2 = inlined_call_operand.hbm [shape: bf16[512,512], index: 2, kind: input, shape index: {}]   ;;  %s3875_s3 = inlined_call_operand.hbm [shape: bf16[512,128], index: 3, kind: input, shape index: {}]   ;;  %s3876_s4 = inlined_call_operand.hbm [shape: f32[4,512], index: 4, kind: input, shape index: {}]   ;;  %s3877_s5 = inlined_call_operand.vmem [shape: f32[1,128], index: 5, kind: input, shape index: {}]   ;;  %s3878_s6 = inlined_call_operand.hbm [shape: f32[8,128], index: 6, kind: output, shape index: {0}]   ;;  %s3879_s7 = inlined_call_operand.hbm [shape: f32[8,128], index: 7, kind: output, shape index: {1}]  }
   0x1   :  { %14 = vsyncpa [#allocation6], 0 }
   0x2   :  { %15 = vsyncpa [#allocation4], 0  ;;  %s38_s26 = sshll.u32 %s3875_s3, 4  ;;  %s39_s26 = int_to_ptr.hbm [resolvable:$true] %s38_s26 }
   0x3   :  { %16 = vsyncpa [#allocation10], 0  ;;  %s3161_s27 = smov [#allocation5]   ;;  %s25_s8 = sshll.u32 %s3874_s2, 4  ;;  %s26_s8 = int_to_ptr.hbm [resolvable:$true] %s25_s8 }
   0x4   :  { %s40_s28 = sshll.u32 %s3161_s27, 4  ;;  %s3162_s9 = smov 64   ;;  %s41_s28 = int_to_ptr.vmem [resolvable:$true] %s40_s28 }
   0x5   :  { %s3163_s10 = smov 4   ;;  %s3164_s11 = smov [#allocation2]  }
   0x6   :  { %46 = dma.hbm_to_vmem [thread:$0]  %s39_s26, 4096, %s41_s28, [#allocation6], %s3162_s9, %s3162_s9, %s3163_s10  }
   0x7   :  { %s27_s12 = sshll.u32 %s3164_s11, 4  ;;  %s3165_s13 = smov 256   ;;  %s28_s12 = int_to_ptr.vmem [resolvable:$true] %s27_s12 }
   0x8   :  { %s3166_s14 = smov 16   ;;  %s52_s16 = sshll.u32 %s3876_s4, 4  ;;  %s53_s16 = int_to_ptr.hbm [resolvable:$true] %s52_s16 }
   0x9   :  { %33 = dma.hbm_to_vmem [thread:$0]  %s26_s8, 16384, %s28_s12, [#allocation3], %s3165_s13, %s3165_s13, %s3166_s14  }
   0xa   :  { %s3167_s17 = smov [#allocation7]  }
   0xb   :  { %s54_s18 = sshll.u32 %s3167_s17, 4  ;;  %s55_s18 = int_to_ptr.vmem [resolvable:$true] %s54_s18 }
   0xc   :  { %57 = dma.hbm_to_vmem [thread:$0]  %s53_s16, 256, %s55_s18, [#allocation6]  }
   0xd   :  { %3153 = dma.done.wait [#allocation3], 16384  }
   0xe   :  { %3154 = vsyncadd [#allocation3], 4294950912 }
   0xf   :  { %3155 = dma.done.wait [#allocation6], 4352  }
  0x10   :  { %3156 = vsyncadd [#allocation6], 4294962944  ;;  %v73_v0 = vld [vmem:[%s3873_s1] sm:$0xff]  ;;  %vm286_vm0 = vcmask 1041408   ;;  %vm282_vm1 = vcmask 31744   ;;  %v3168_v28 = vmov 8.0  }
  0x11   :  { %277 = vst [vmem:[#allocation1] ss:$4 sm:$0xff] %v73_v0  ;;  %v2981_v6 = vld [vmem:[%s3872_s0] sm:$0xff]  ;;  %v2295_v10 = vld [vmem:[#allocation2 + $0xe0] sm:$0xf]  ;;  %2993 = vrcp.f32 %v3168_v28  ;;  %s2146_s24 = sshll.u32 %s3878_s6, 4  ;;  %s2147_s24 = int_to_ptr.hbm [resolvable:$true] %s2146_s24 }
  0x12   :  { %v2851_v11 = vld [vmem:[#allocation2 + $0xec] sm:$0xf0]  ;;  %v2423_v12 = vld [vmem:[#allocation2 + $0x1e0] sm:$0xf]  ;;  %s3170_s25 = smov [#allocation9]   ;;  %s2157_s28 = sshll.u32 %s3879_s7, 4  ;;  %s2158_s28 = int_to_ptr.hbm [resolvable:$true] %s2157_s28 }
  0x13   :  { %v2296_v13 = vor.u32 %v2851_v11, %v2295_v10  ;;  %v2883_v14 = vld [vmem:[#allocation2 + $0x1ec] sm:$0xf0]  ;;  %v2279_v16 = vld [vmem:[#allocation2 + $0xc0] sm:$0xf]  ;;  %s2155_s26 = sshll.u32 %s3170_s25, 4  ;;  %s2156_s26 = int_to_ptr.vmem [resolvable:$true] %s2155_s26 }
  0x14   :  { %v2424_v15 = vor.u32 %v2883_v14, %v2423_v12  ;;  %v2847_v17 = vld [vmem:[#allocation2 + $0xcc] sm:$0xf0]  ;;  %v2407_v18 = vld [vmem:[#allocation2 + $0x1c0] sm:$0xf] }
  0x15   :  { %v2280_v19 = vor.u32 %v2847_v17, %v2279_v16  ;;  %v2879_v20 = vld [vmem:[#allocation2 + $0x1cc] sm:$0xf0]  ;;  %v2551_v22 = vld [vmem:[#allocation2 + $0x2e0] sm:$0xf] }
  0x16   :  { %v2408_v21 = vor.u32 %v2879_v20, %v2407_v18  ;;  %v2915_v23 = vld [vmem:[#allocation2 + $0x2ec] sm:$0xf0]  ;;  %v2679_v24 = vld [vmem:[#allocation2 + $0x3e0] sm:$0xf] }
  0x17   :  { %v2552_v25 = vor.u32 %v2915_v23, %v2551_v22  ;;  %v2947_v26 = vld [vmem:[#allocation2 + $0x3ec] sm:$0xf0]  ;;  %v2994_v29 = vpop.eup %2993  ;;  %v2263_v31 = vld [vmem:[#allocation2 + $0xa0] sm:$0xf] }
  0x18   :  { %v278_v1 = vld.sshfl [vmem:[#allocation1] sm:$0xff pattern:$0x73625140]  ;;  %v279_v2 = vld.sshfl [vmem:[#allocation1 + $0x8] sm:$0xff pattern:$0x73625140]  ;;  %v2680_v27 = vor.u32 %v2947_v26, %v2679_v24  ;;  %vm404_vm2 = vweird.f32 %v2994_v29 }
  0x19   :  { %v287_v3 = vsel %vm286_vm0, %v278_v1, 0  ;;  %v289_v4 = vsel %vm286_vm0, %v279_v2, 0  ;;  %v280_v5 = vld.sshfl [vmem:[#allocation1 + $0x10] sm:$0xff pattern:$0x73625140]  ;;  %v400_v30 = vmul.f32 8.0, %v2994_v29 }
  0x1a   :  { %302 = vmatpush.bf16.msra.mxu0 %v287_v3  ;;  %316 = vmatpush.bf16.msra.mxu1 %v289_v4  ;;  %v291_v7 = vsel %vm286_vm0, %v280_v5, 0  ;;  %v281_v8 = vld.sshfl [vmem:[#allocation1 + $0x18] sm:$0xff pattern:$0x73625140]  ;;  %v2391_v33 = vld [vmem:[#allocation2 + $0x1a0] sm:$0xf] }
  0x1b   :  { %330 = vmatpush.bf16.msra.mxu2 %v291_v7  ;;  %v293_v9 = vsel %vm286_vm0, %v281_v8, 0  ;;  %v2843_v32 = vld [vmem:[#allocation2 + $0xac] sm:$0xf0]  ;;  %v2535_v37 = vld [vmem:[#allocation2 + $0x2c0] sm:$0xf]  ;;  %v401_v40 = vsub.f32 1.0, %v400_v30 }
  0x1c   :  { %344 = vmatpush.bf16.msra.mxu3 %v293_v9  ;;  %v2264_v34 = vor.u32 %v2843_v32, %v2263_v31  ;;  %v2875_v35 = vld [vmem:[#allocation2 + $0x1ac] sm:$0xf0]  ;;  %v2663_v39 = vld [vmem:[#allocation2 + $0x3c0] sm:$0xf] }
  0x1d   :  { %2177 = vmatmul.msk.bf16.vlgmr.msra.gmra.mxu0 %vm282_vm1, %v2981_v6  ;;  %2178 = vmatmul.msk.bf16.vlgmr.msra.gmra.mxu1 %vm282_vm1, %v2981_v6  ;;  %v2392_v36 = vor.u32 %v2875_v35, %v2391_v33  ;;  %v2911_v38 = vld [vmem:[#allocation2 + $0x2cc] sm:$0xf0]  ;;  %v2247_v44 = vld [vmem:[#allocation2 + $0x80] sm:$0xf]  ;;  %v402_v56 = vmul.f32 %v2994_v29, %v401_v40 }
  0x1e   :  { %2179 = vmatmul.msk.bf16.vlgmr.msra.gmra.mxu2 %vm282_vm1, %v2981_v6  ;;  %1300 = vmatpush.bf16.msrb.mxu0 %v2296_v13  ;;  %v2536_v41 = vor.u32 %v2911_v38, %v2535_v37  ;;  %v2943_v42 = vld [vmem:[#allocation2 + $0x3cc] sm:$0xf0]  ;;  %v2375_v46 = vld [vmem:[#allocation2 + $0x180] sm:$0xf] }
  0x1f   :  { %2180 = vmatmul.msk.bf16.vlgmr.msra.gmra.mxu3 %vm282_vm1, %v2981_v6  ;;  %1314 = vmatpush.bf16.msrb.mxu1 %v2424_v15  ;;  %v2664_v43 = vor.u32 %v2943_v42, %v2663_v39  ;;  %v2839_v45 = vld [vmem:[#allocation2 + $0x8c] sm:$0xf0]  ;;  %v403_v1 = vadd.f32 %v2994_v29, %v402_v56 }
  0x20   :  { %1328 = vmatpush.bf16.msrb.mxu2 %v2552_v25  ;;  %1342 = vmatpush.bf16.msrb.mxu3 %v2680_v27  ;;  %v2248_v47 = vor.u32 %v2839_v45, %v2247_v44  ;;  %v2871_v48 = vld [vmem:[#allocation2 + $0x18c] sm:$0xf0] }
  0x21   :  { %v2376_v51 = vor.u32 %v2871_v48, %v2375_v46  ;;  %v3243_v12 = vsel %vm404_vm2, %v2994_v29, %v403_v1 }
  0x22   :  { %1301 = vmatpush.bf16.msrb.mxu0 %v2280_v19 }
  0x23   :  { %1315 = vmatpush.bf16.msrb.mxu1 %v2408_v21 }
  0x24   :  { %1329 = vmatpush.bf16.msrb.mxu2 %v2536_v41  ;;  %1343 = vmatpush.bf16.msrb.mxu3 %v2664_v43 }
  0x26   :  { %1302 = vmatpush.bf16.msrb.mxu0 %v2264_v34 }
  0x27   :  { %1316 = vmatpush.bf16.msrb.mxu1 %v2392_v36 }
  0x2a   :  { %1303 = vmatpush.bf16.msrb.mxu0 %v2248_v47 }
  0x2b   :  { %1317 = vmatpush.bf16.msrb.mxu1 %v2376_v51 }
  0x9a   :  { %v3226_v49 = vpop.f32.mrf.mxu0  ;;  %v3228_v50 = vpop.f32.mrf.mxu1 }
  0x9b   :  { %v351_v52 = vrot.slane %v3226_v49, 4  ;;  %v414_v53 = vmul.f32 %v3226_v49, %v3226_v49  ;;  %v357_v54 = vrot.slane %v3228_v50, 4  ;;  %v415_v55 = vmul.f32 %v3228_v50, %v3228_v50 }
  0x9d   :  { %v352_v57 = vadd.f32 %v351_v52, %v3226_v49  ;;  %v422_v58 = vrot.slane %v414_v53, 4  ;;  %v358_v59 = vadd.f32 %v357_v54, %v3228_v50  ;;  %v428_v60 = vrot.slane %v415_v55, 4 }
  0x9f   :  { %v353_v61 = vrot.slane %v352_v57, 2  ;;  %v423_v62 = vadd.f32 %v422_v58, %v414_v53  ;;  %v359_v63 = vrot.slane %v358_v59, 2  ;;  %v429_v0 = vadd.f32 %v428_v60, %v415_v55 }
  0xa1   :  { %v354_v2 = vadd.f32 %v353_v61, %v352_v57  ;;  %v424_v3 = vrot.slane %v423_v62, 2  ;;  %v360_v4 = vadd.f32 %v359_v63, %v358_v59  ;;  %v430_v5 = vrot.slane %v429_v0, 2  ;;  %v3238_v6 = vpop.f32.mrf.mxu2 }
  0xa2   :  { %v363_v7 = vrot.slane %v3238_v6, 4  ;;  %v416_v8 = vmul.f32 %v3238_v6, %v3238_v6  ;;  %v3246_v16 = vpop.f32.mrf.mxu3  ;;  %v3262_v34 = vpop.f32.mrf.mxu0 }
  0xa3   :  { %v355_v9 = vrot.slane %v354_v2, 1  ;;  %v425_v10 = vadd.f32 %v424_v3, %v423_v62  ;;  %v361_v11 = vrot.slane %v360_v4, 1  ;;  %v431_v13 = vadd.f32 %v430_v5, %v429_v0  ;;  %v3281_v63 = vpop.f32.mrf.mxu1 }
  0xa4   :  { %v364_v14 = vadd.f32 %v363_v7, %v3238_v6  ;;  %v434_v15 = vrot.slane %v416_v8, 4  ;;  %v369_v26 = vrot.slane %v3246_v16, 4  ;;  %v417_v30 = vmul.f32 %v3246_v16, %v3246_v16  ;;  %3887 = vst [vmem:[#allocation15_spill] sm:$0xff] %v3281_v63 }
  0xa5   :  { %v356_v17 = vadd.f32 %v355_v9, %v354_v2  ;;  %v426_v18 = vrot.slane %v425_v10, 1  ;;  %v362_v19 = vadd.f32 %v361_v11, %v360_v4  ;;  %v432_v20 = vrot.slane %v431_v13, 1 }
  0xa6   :  { %v365_v21 = vrot.slane %v364_v14, 2  ;;  %v435_v22 = vadd.f32 %v434_v15, %v416_v8  ;;  %v370_v39 = vadd.f32 %v369_v26, %v3246_v16  ;;  %v440_v40 = vrot.slane %v417_v30, 4  ;;  %v3302_v26 = vld [vmem:[#allocation7] sm:$0xff] }
  0xa7   :  { %v3249_v23 = vmul.f32 %v3243_v12, %v356_v17  ;;  %v427_v24 = vadd.f32 %v426_v18, %v425_v10  ;;  %v3252_v25 = vmul.f32 %v3243_v12, %v362_v19  ;;  %v433_v27 = vadd.f32 %v432_v20, %v431_v13 }
  0xa8   :  { %v366_v28 = vadd.f32 %v365_v21, %v364_v14  ;;  %v436_v29 = vrot.slane %v435_v22, 2  ;;  %v375_v44 = vrot.slane %v3262_v34, 4  ;;  %v371_v46 = vrot.slane %v370_v39, 2 }
  0xa9   :  { %v470_v31 = vmul.f32 %v427_v24, %v3243_v12  ;;  %v478_v32 = vmul.f32 %v3249_v23, %v3249_v23  ;;  %v479_v33 = vmul.f32 %v3252_v25, %v3252_v25  ;;  %v471_v35 = vmul.f32 %v433_v27, %v3243_v12  ;;  %v3293_v18 = vpop.f32.mrf.mxu2 }
  0xaa   :  { %v367_v36 = vrot.slane %v366_v28, 1  ;;  %v437_v37 = vadd.f32 %v436_v29, %v435_v22  ;;  %v441_v47 = vadd.f32 %v440_v40, %v417_v30  ;;  %v376_v53 = vadd.f32 %v375_v44, %v3262_v34  ;;  %3888 = vst [vmem:[#allocation16_spill] sm:$0xff] %v3293_v18 }
  0xab   :  { %v486_v38 = vsub.f32 %v470_v31, %v478_v32  ;;  %v487_v41 = vsub.f32 %v471_v35, %v479_v33  ;;  %v372_v55 = vadd.f32 %v371_v46, %v370_v39  ;;  %v418_v57 = vmul.f32 %v3262_v34, %v3262_v34 }
  0xac   :  { %v368_v42 = vadd.f32 %v367_v36, %v366_v28  ;;  %v438_v43 = vrot.slane %v437_v37, 1  ;;  %v442_v56 = vrot.slane %v441_v47, 2  ;;  %v377_v3 = vrot.slane %v376_v53, 2 }
  0xad   :  { %v494_v45 = vmax.f32 %v486_v38, 0.0  ;;  %v495_v48 = vmax.f32 %v487_v41, 0.0  ;;  %v373_v61 = vrot.slane %v372_v55, 1  ;;  %v446_v4 = vrot.slane %v418_v57, 4 }
  0xae   :  { %v3268_v51 = vmul.f32 %v3243_v12, %v368_v42  ;;  %v439_v52 = vadd.f32 %v438_v43, %v437_v37  ;;  %v443_v62 = vadd.f32 %v442_v56, %v441_v47  ;;  %v381_v7 = vrot.slane %v3281_v63, 4 }
  0xaf   :  { %v3271_v54 = vadd.f32 1e-05, %v494_v45  ;;  %v3275_v58 = vadd.f32 1e-05, %v495_v48  ;;  %v374_v1 = vadd.f32 %v373_v61, %v372_v55  ;;  %v419_v8 = vmul.f32 %v3281_v63, %v3281_v63 }
  0xb0   :  { %v472_v59 = vmul.f32 %v439_v52, %v3243_v12  ;;  %v480_v60 = vmul.f32 %v3268_v51, %v3268_v51  ;;  %v444_v2 = vrot.slane %v443_v62, 1  ;;  %v378_v11 = vadd.f32 %v377_v3, %v376_v53 }
  0xb1   :  { %2995 = vrsqrt.f32 %v3271_v54  ;;  %v3288_v9 = vmul.f32 %v3243_v12, %v374_v1  ;;  %v447_v14 = vadd.f32 %v446_v4, %v418_v57  ;;  %v382_v15 = vadd.f32 %v381_v7, %v3281_v63 }
  0xb2   :  { %2997 = vrsqrt.f32 %v3275_v58  ;;  %v488_v0 = vsub.f32 %v472_v59, %v480_v60  ;;  %v445_v10 = vadd.f32 %v444_v2, %v443_v62  ;;  %v452_v17 = vrot.slane %v419_v8, 4  ;;  %v3331_v60 = vld [vmem:[#allocation7 + $0x8] sm:$0xff] }
  0xb3   :  { %v481_v21 = vmul.f32 %v3288_v9, %v3288_v9  ;;  %v379_v22 = vrot.slane %v378_v11, 1  ;;  %v387_v30 = vrot.slane %v3293_v18, 4  ;;  %v448_v32 = vrot.slane %v447_v14, 2 }
  0xb4   :  { %v496_v5 = vmax.f32 %v488_v0, 0.0  ;;  %v473_v20 = vmul.f32 %v445_v10, %v3243_v12  ;;  %v383_v33 = vrot.slane %v382_v15, 2  ;;  %v453_v35 = vadd.f32 %v452_v17, %v419_v8 }
  0xb5   :  { %v380_v29 = vadd.f32 %v379_v22, %v378_v11  ;;  %v608_v36 = vperm.slane %v3302_v26, 0  ;;  %v609_v37 = vperm.slane %v3302_v26, 4  ;;  %v449_v40 = vadd.f32 %v448_v32, %v447_v14  ;;  %v2831_v11 = vld [vmem:[#allocation2 + $0x4c] sm:$0xf0] }
  0xb6   :  { %v3290_v13 = vadd.f32 1e-05, %v496_v5  ;;  %v489_v28 = vsub.f32 %v473_v20, %v481_v21  ;;  %v384_v41 = vadd.f32 %v383_v33, %v382_v15  ;;  %v454_v42 = vrot.slane %v453_v35, 2 }
  0xb7   :  { %v3295_v19 = vpop.eup %2995  ;;  %v3313_v39 = vmul.f32 %v3243_v12, %v380_v29  ;;  %v388_v45 = vadd.f32 %v387_v30, %v3293_v18  ;;  %v450_v48 = vrot.slane %v449_v40, 1  ;;  %v3322_v55 = vperm.slane %v608_v36, 0 }
  0xb8   :  { %v3300_v24 = vpop.eup %2997  ;;  %2999 = vrsqrt.f32 %v3290_v13  ;;  %v519_v27 = vmul.f32 %v3295_v19, %v3271_v54  ;;  %v497_v38 = vmax.f32 %v489_v28, 0.0  ;;  %v385_v52 = vrot.slane %v384_v41, 1 }
  0xb9   :  { %v529_v31 = vmul.f32 %v3300_v24, %v3275_v58  ;;  %v455_v53 = vadd.f32 %v454_v42, %v453_v35  ;;  %3889 = vst [vmem:[#allocation17_spill] sm:$0xff] %v3322_v55  ;;  %v3324_v56 = vperm.slane %v609_v37, 0  ;;  %v451_v61 = vadd.f32 %v450_v48, %v449_v40 }
  0xba   :  { %v520_v43 = vmul.f32 %v3295_v19, %v519_v27  ;;  %v3316_v44 = vadd.f32 1e-05, %v497_v38  ;;  %v482_v62 = vmul.f32 %v3313_v39, %v3313_v39  ;;  %v386_v0 = vadd.f32 %v385_v52, %v384_v41 }
  0xbb   :  { %v530_v47 = vmul.f32 %v3300_v24, %v529_v31  ;;  %3890 = vst [vmem:[#allocation18_spill] sm:$0xff] %v3324_v56  ;;  %v456_v3 = vrot.slane %v455_v53, 1  ;;  %v389_v4 = vrot.slane %v388_v45, 2  ;;  %v474_v8 = vmul.f32 %v451_v61, %v3243_v12  ;;  %v3355_v31 = vpop.f32.mrf.mxu3  ;;  %v2907_v61 = vld [vmem:[#allocation2 + $0x2ac] sm:$0xf0] }
  0xbc   :  { %3001 = vrsqrt.f32 %v3316_v44  ;;  %v521_v1 = vmul.f32 0.5, %v520_v43  ;;  %v3340_v10 = vmul.f32 %v3243_v12, %v386_v0  ;;  %v420_v17 = vmul.f32 %v3293_v18, %v3293_v18  ;;  %3892 = vst [vmem:[#allocation20_spill] sm:$0xff] %v3355_v31  ;;  %v2487_v18 = vld [vmem:[#allocation2 + $0x260] sm:$0xf]  ;;  %v3442_v56 = vld [vmem:[#allocation2 + $0x10c] sm:$0xf0] }
  0xbd   :  { %v531_v5 = vmul.f32 0.5, %v530_v47  ;;  %v457_v15 = vadd.f32 %v456_v3, %v455_v53  ;;  %vm524_vm3 = vweird.f32 %v3271_v54  ;;  %vm534_vm4 = vweird.f32 %v3275_v58  ;;  %v2939_v3 = vld [vmem:[#allocation2 + $0x3ac] sm:$0xf0] }
  0xbe   :  { %v3319_v46 = vpop.eup %2999  ;;  %3891 = vst [vmem:[#allocation19_spill] sm:$0xff] %v3340_v10  ;;  %v490_v20 = vsub.f32 %v474_v8, %v482_v62  ;;  %v483_v21 = vmul.f32 %v3340_v10, %v3340_v10  ;;  %v522_v27 = vsub.f32 1.5, %v521_v1  ;;  %v390_v30 = vadd.f32 %v389_v4, %v388_v45  ;;  %v2647_v1 = vld [vmem:[#allocation2 + $0x3a0] sm:$0xf] }
  0xbf   :  { %v539_v57 = vmul.f32 %v3319_v46, %v3290_v13  ;;  %v475_v29 = vmul.f32 %v457_v15, %v3243_v12  ;;  %v532_v32 = vsub.f32 1.5, %v531_v5  ;;  %vm525_vm5 = vweird.f32 %v3295_v19  ;;  %v2231_v4 = vld [vmem:[#allocation2 + $0x60] sm:$0xf]  ;;  %v2835_v5 = vld [vmem:[#allocation2 + $0x6c] sm:$0xf0] }
  0xc0   :  { %v498_v36 = vmax.f32 %v490_v20, 0.0  ;;  %v391_v38 = vrot.slane %v390_v30, 1  ;;  %v458_v40 = vrot.slane %v420_v17, 4  ;;  %v393_v43 = vrot.slane %v3355_v31, 4  ;;  %vm3383_vm7 = vmor %vm524_vm3, %vm525_vm5  ;;  %v2215_v8 = vld [vmem:[#allocation2 + $0x40] sm:$0xf] }
  0xc1   :  { %v540_v7 = vmul.f32 %v3319_v46, %v539_v57  ;;  %v491_v37 = vsub.f32 %v475_v29, %v483_v21  ;;  %v421_v45 = vmul.f32 %v3355_v31, %v3355_v31  ;;  %v3367_v47 = vmul.f32 %v3295_v19, %v522_v27  ;;  %v2519_v57 = vld [vmem:[#allocation2 + $0x2a0] sm:$0xf]  ;;  %v2867_v21 = vld [vmem:[#allocation2 + $0x16c] sm:$0xf0] }
  0xc2   :  { %v3351_v22 = vpop.eup %3001  ;;  %v3361_v42 = vadd.f32 1e-05, %v498_v36  ;;  %v392_v52 = vadd.f32 %v391_v38, %v390_v30  ;;  %v459_v53 = vadd.f32 %v458_v40, %v420_v17  ;;  %v3370_v62 = vmul.f32 %v3300_v24, %v532_v32  ;;  %v2903_v36 = vld [vmem:[#allocation2 + $0x28c] sm:$0xf0] }
  0xc3   :  { %v541_v33 = vmul.f32 0.5, %v540_v7  ;;  %v549_v35 = vmul.f32 %v3351_v22, %v3316_v44  ;;  %v499_v48 = vmax.f32 %v491_v37, 0.0  ;;  %vm535_vm6 = vweird.f32 %v3300_v24  ;;  %v2359_v7 = vld [vmem:[#allocation2 + $0x160] sm:$0xf]  ;;  %v2887_v27 = vld [vmem:[#allocation2 + $0x20c] sm:$0xf0] }
  0xc4   :  { %3003 = vrsqrt.f32 %v3361_v42  ;;  %v460_v17 = vrot.slane %v459_v53, 2  ;;  %v394_v20 = vadd.f32 %v393_v43, %v3355_v31  ;;  %v464_v32 = vrot.slane %v421_v45, 4  ;;  %vm3397_vm8 = vmor %vm534_vm4, %vm535_vm6  ;;  %v2935_v43 = vld [vmem:[#allocation2 + $0x38c] sm:$0xf0] }
  0xc5   :  { %v550_v41 = vmul.f32 %v3351_v22, %v549_v35  ;;  %v542_v0 = vsub.f32 1.5, %v541_v33  ;;  %v3376_v15 = vadd.f32 1e-05, %v499_v48  ;;  %v2520_v33 = vor.u32 %v2907_v61, %v2519_v57  ;;  %v2503_v35 = vld [vmem:[#allocation2 + $0x280] sm:$0xf] }
  0xc6   :  { %v3403_v38 = vmul.f32 %v3243_v12, %v392_v52  ;;  %v461_v40 = vadd.f32 %v460_v17, %v459_v53  ;;  %v395_v58 = vrot.slane %v394_v20, 2  ;;  %v465_v61 = vadd.f32 %v464_v32, %v421_v45  ;;  %v2343_v53 = vld [vmem:[#allocation2 + $0x140] sm:$0xf]  ;;  %v2863_v17 = vld [vmem:[#allocation2 + $0x14c] sm:$0xf0] }
  0xc7   :  { %v551_v29 = vmul.f32 0.5, %v550_v41  ;;  %3005 = vrsqrt.f32 %v3376_v15  ;;  %v2631_v41 = vld [vmem:[#allocation2 + $0x380] sm:$0xf]  ;;  %v3410_v57 = vmul.f32 %v3319_v46, %v542_v0  ;;  %1330 = vmatpush.bf16.msrb.mxu2 %v2520_v33  ;;  %v2648_v28 = vor.u32 %v2939_v3, %v2647_v1  ;;  %v2899_v0 = vld [vmem:[#allocation2 + $0x26c] sm:$0xf0] }
  0xc8   :  { %3897 = vst [vmem:[#allocation21_spill] sm:$0xff] %v3403_v38  ;;  %v462_v30 = vrot.slane %v461_v40, 1  ;;  %v2232_v52 = vor.u32 %v2835_v5, %v2231_v4  ;;  %v2360_v14 = vor.u32 %v2867_v21, %v2359_v7  ;;  %v396_v59 = vadd.f32 %v395_v58, %v394_v20  ;;  %v2615_v3 = vld [vmem:[#allocation2 + $0x360] sm:$0xf]  ;;  %v2931_v4 = vld [vmem:[#allocation2 + $0x36c] sm:$0xf0] }
  0xc9   :  { %v552_v37 = vsub.f32 1.5, %v551_v29  ;;  %v466_v31 = vrot.slane %v465_v61, 2  ;;  %v2504_v48 = vor.u32 %v2903_v36, %v2503_v35  ;;  %vm545_vm9 = vweird.f32 %v3319_v46  ;;  %1344 = vmatpush.bf16.msrb.mxu3 %v2648_v28  ;;  %v2199_v5 = vld [vmem:[#allocation2 + $0x20] sm:$0xf]  ;;  %v2827_v33 = vld [vmem:[#allocation2 + $0x2c] sm:$0xf0] }
  0xca   :  { %v3412_v2 = vpop.eup %3003  ;;  %v463_v32 = vadd.f32 %v462_v30, %v461_v40  ;;  %v484_v1 = vmul.f32 %v3403_v38, %v3403_v38  ;;  %1304 = vmatpush.bf16.msrb.mxu0 %v2232_v52  ;;  %vm555_vm10 = vweird.f32 %v3351_v22  ;;  %v397_v7 = vrot.slane %v396_v59, 1  ;;  %1318 = vmatpush.bf16.msrb.mxu1 %v2360_v14  ;;  %v2327_v35 = vld [vmem:[#allocation2 + $0x120] sm:$0xf]  ;;  %v2859_v58 = vld [vmem:[#allocation2 + $0x12c] sm:$0xf0] }
  0xcb   :  { %v559_v45 = vmul.f32 %v3412_v2, %v3361_v42  ;;  %v467_v20 = vadd.f32 %v466_v31, %v465_v61  ;;  %1331 = vmatpush.bf16.msrb.mxu2 %v2504_v48  ;;  %v2632_v21 = vor.u32 %v2935_v43, %v2631_v41  ;;  %v2216_v29 = vor.u32 %v2831_v11, %v2215_v8  ;;  %v2471_v52 = vld [vmem:[#allocation2 + $0x240] sm:$0xf]  ;;  %v2895_v31 = vld [vmem:[#allocation2 + $0x24c] sm:$0xf0] }
  0xcc   :  { %vm544_vm11 = vweird.f32 %v3290_v13  ;;  %vm564_vm12 = vweird.f32 %v3361_v42  ;;  %v476_v30 = vmul.f32 %v463_v32, %v3243_v12  ;;  %v2344_v40 = vor.u32 %v2863_v17, %v2343_v53  ;;  %v3432_v43 = vld [vmem:[#allocation2 + $0x340] sm:$0xf]  ;;  %v3434_v48 = vld [vmem:[#allocation2 + $0x34c] sm:$0xf0] }
  0xcd   :  { %v3420_v36 = vpop.eup %3005  ;;  %v560_v28 = vmul.f32 %v3412_v2, %v559_v45  ;;  %v3427_v14 = vmul.f32 %v3351_v22, %v552_v37  ;;  %vm554_vm13 = vweird.f32 %v3316_v44  ;;  %v398_v8 = vadd.f32 %v397_v7, %v396_v59  ;;  %v3436_v61 = vld [vmem:[#allocation2] sm:$0xf]  ;;  %v3438_v53 = vld [vmem:[#allocation2 + $0xc] sm:$0xf0]  ;;  %1345 = vmatpush.bf16.msrb.mxu3 %v2632_v21  ;;  %v3444_v59 = vld [vmem:[#allocation2 + $0xe4] sm:$0xf] }
  0xce   :  { %v569_v11 = vmul.f32 %v3420_v36, %v3376_v15  ;;  %v468_v41 = vrot.slane %v467_v20, 1  ;;  %v492_v45 = vsub.f32 %v476_v30, %v484_v1  ;;  %1305 = vmatpush.bf16.msrb.mxu0 %v2216_v29  ;;  %v2488_v37 = vor.u32 %v2899_v0, %v2487_v18  ;;  %v3440_v38 = vld [vmem:[#allocation2 + $0x100] sm:$0xf]  ;;  %1319 = vmatpush.bf16.msrb.mxu1 %v2344_v40  ;;  %v3450_v1 = vld [vmem:[#allocation2 + $0x1e4] sm:$0xf]  ;;  %vm3504_vm1 = vmor %vm544_vm11, %vm545_vm9 }
  0xcf   :  { %v561_v17 = vmul.f32 0.5, %v560_v28  ;;  %v2616_v32 = vor.u32 %v2931_v4, %v2615_v3  ;;  %v3448_v55 = vmul.f32 %v3243_v12, %v398_v8  ;;  %v2200_v10 = vor.u32 %v2827_v33, %v2199_v5  ;;  %v2297_v28 = vld [vmem:[#allocation2 + $0xf0] sm:$0xf0]  ;;  %v2455_v29 = vld [vmem:[#allocation2 + $0x220] sm:$0xf]  ;;  %vm3536_vm2 = vmor %vm554_vm13, %vm555_vm10 }
  0xd0   :  { %v570_v7 = vmul.f32 %v3420_v36, %v569_v11  ;;  %v469_v63 = vadd.f32 %v468_v41, %v467_v20  ;;  %v3452_v21 = vld [vmem:[#allocation2 + $0x1f0] sm:$0xf0]  ;;  %v500_v0 = vmax.f32 %v492_v45, 0.0  ;;  %1332 = vmatpush.bf16.msrb.mxu2 %v2488_v37  ;;  %v2328_v3 = vor.u32 %v2859_v58, %v2327_v35  ;;  %v2891_v30 = vld [vmem:[#allocation2 + $0x22c] sm:$0xf0] }
  0xd1   :  { %v562_v18 = vsub.f32 1.5, %v561_v17  ;;  %v2472_v4 = vor.u32 %v2895_v31, %v2471_v52  ;;  %vm565_vm14 = vweird.f32 %v3412_v2  ;;  %v485_v5 = vmul.f32 %v3448_v55, %v3448_v55  ;;  %v3458_v20 = vld [vmem:[#allocation2 + $0x320] sm:$0xf]  ;;  %v3460_v33 = vld [vmem:[#allocation2 + $0x32c] sm:$0xf0]  ;;  %1346 = vmatpush.bf16.msrb.mxu3 %v2616_v32 }
  0xd2   :  { %v571_v11 = vmul.f32 0.5, %v570_v7  ;;  %v477_v8 = vmul.f32 %v469_v63, %v3243_v12  ;;  %v3463_v41 = vadd.f32 1e-05, %v500_v0  ;;  %1306 = vmatpush.bf16.msrb.mxu0 %v2200_v10  ;;  %v2600_v35 = vor.u32 %v3434_v48, %v3432_v43  ;;  %v3469_v63 = vld [vmem:[#allocation2 + $0xc4] sm:$0xf]  ;;  %1320 = vmatpush.bf16.msrb.mxu1 %v2328_v3  ;;  %vm3492_vm15 = vmor %vm564_vm12, %vm565_vm14 }
  0xd3   :  { %v563_v40 = vmul.f32 %v3412_v2, %v562_v18  ;;  %v2184_v58 = vor.u32 %v3438_v53, %v3436_v61  ;;  %v3471_v52 = vld [vmem:[#allocation2 + $0xd0] sm:$0xf0]  ;;  %v2312_v45 = vor.u32 %v3442_v56, %v3440_v38  ;;  %v2300_v37 = vor.u32 %v3444_v59, %v2297_v28  ;;  %v3476_v32 = vld [vmem:[#allocation2 + $0x1c4] sm:$0xf]  ;;  %v3512_v59 = vld [vmem:[#allocation2 + $0x300] sm:$0xf] }
  0xd4   :  { %v572_v31 = vsub.f32 1.5, %v571_v11  ;;  %v493_v17 = vsub.f32 %v477_v8, %v485_v5  ;;  %v3478_v10 = vld [vmem:[#allocation2 + $0x1d0] sm:$0xf0]  ;;  %v3898_v43 = vsub.f32 %v3226_v49, %v3249_v23  ;;  %v3899_v48 = vsel %vm3383_vm7, %v3295_v19, %v3367_v47  ;;  %1333 = vmatpush.bf16.msrb.mxu2 %v2472_v4  ;;  %v2439_v23 = vld [vmem:[#allocation2 + $0x200] sm:$0xf] }
  0xd5   :  { %vm575_vm0 = vweird.f32 %v3420_v36  ;;  %3007 = vrsqrt.f32 %v3463_v41  ;;  %v2428_v49 = vor.u32 %v3450_v1, %v3452_v21  ;;  %v567_v42 = vsel %vm3492_vm15, %v3412_v2, %v563_v40  ;;  %v3514_v7 = vld [vmem:[#allocation2 + $0x30c] sm:$0xf0]  ;;  %1347 = vmatpush.bf16.msrb.mxu3 %v2600_v35  ;;  %v2681_v0 = vld [vmem:[#allocation2 + $0x3f0] sm:$0xf0]  ;;  %v2841_v11 = vld [vmem:[#allocation2 + $0xa4] sm:$0xf] }
  0xd6   :  { %v598_v61 = vmul.f32 %v3899_v48, %v3898_v43  ;;  %v573_v47 = vmul.f32 %v3420_v36, %v572_v31  ;;  %v501_v38 = vmax.f32 %v493_v17, 0.0  ;;  %v2456_v53 = vor.u32 %v2891_v30, %v2455_v29  ;;  %1307 = vmatpush.bf16.msrb.mxu0 %v2184_v58  ;;  %1321 = vmatpush.bf16.msrb.mxu1 %v2312_v45  ;;  %v2265_v8 = vld [vmem:[#allocation2 + $0xb0] sm:$0xf0]  ;;  %v3915_v31 = vld [vmem:[#allocation19_spill] sm:$0xff] }
  0xd7   :  { %v3904_v28 = vsub.f32 %v3228_v50, %v3252_v25  ;;  %v3905_v13 = vsel %vm3397_vm8, %v3300_v24, %v3370_v62  ;;  %v547_v2 = vsel %vm3504_vm1, %v3319_v46, %v3410_v57  ;;  %v3906_v21 = vperm.slane %v3331_v60, 0  ;;  %v2913_v24 = vld [vmem:[#allocation2 + $0x2e4] sm:$0xf]  ;;  %v2553_v62 = vld [vmem:[#allocation2 + $0x2f0] sm:$0xf0]  ;;  %v3920_v50 = vld [vmem:[#allocation16_spill] sm:$0xff] }
  0xd8   :  { %v2584_v25 = vor.u32 %v3460_v33, %v3458_v20  ;;  %v557_v46 = vsel %vm3536_vm2, %v3351_v22, %v3427_v14  ;;  %vm574_vm3 = vweird.f32 %v3376_v15  ;;  %v3547_v54 = vadd.f32 1e-05, %v501_v38  ;;  %v2945_v57 = vld [vmem:[#allocation2 + $0x3e4] sm:$0xf]  ;;  %1334 = vmatpush.bf16.msrb.mxu2 %v2456_v53  ;;  %v2393_v20 = vld [vmem:[#allocation2 + $0x1b0] sm:$0xf0] }
  0xd9   :  { %v599_v1 = vmul.f32 %v3905_v13, %v3904_v28  ;;  %v3530_v18 = vperm.slane %v3906_v21, 0  ;;  %v2284_v44 = vor.u32 %v3469_v63, %v3471_v52  ;;  %v3909_v3 = vperm.slane %v3331_v60, 4  ;;  %vm3560_vm4 = vmor %vm574_vm3, %vm575_vm0  ;;  %v3916_v17 = vld [vmem:[#allocation15_spill] sm:$0xff]  ;;  %v2377_v38 = vld [vmem:[#allocation2 + $0x190] sm:$0xf0] }
  0xda   :  { %1356 = vmatpush.bf16.msra.mxu0 %v2300_v37  ;;  %v3910_v29 = vsub.f32 %v3262_v34, %v3313_v39  ;;  %1370 = vmatpush.bf16.msra.mxu1 %v2428_v49  ;;  %v2412_v15 = vor.u32 %v3476_v32, %v3478_v10  ;;  %v2440_v14 = vor.u32 %v2887_v27, %v2439_v23  ;;  %3009 = vrsqrt.f32 %v3547_v54  ;;  %v2873_v39 = vld [vmem:[#allocation2 + $0x1a4] sm:$0xf]  ;;  %v2537_v32 = vld [vmem:[#allocation2 + $0x2d0] sm:$0xf0]  ;;  %v3918_v49 = vld [vmem:[#allocation18_spill] sm:$0xff] }
  0xdb   :  { %v3553_v4 = vperm.slane %v3909_v3, 0  ;;  %v577_v5 = vsel %vm3560_vm4, %v3420_v36, %v573_v47  ;;  %v2556_v34 = vor.u32 %v2913_v24, %v2553_v62  ;;  %v628_v33 = vperm.slane %v3302_v26, 1  ;;  %v3571_v40 = vpop.eup %3007  ;;  %1348 = vmatpush.bf16.msrb.mxu3 %v2584_v25  ;;  %v2909_v37 = vld [vmem:[#allocation2 + $0x2c4] sm:$0xf]  ;;  %v3917_v10 = vld [vmem:[#allocation17_spill] sm:$0xff] }
  0xdc   :  { %v602_v30 = vmul.f32 %v567_v42, %v3910_v29  ;;  %v3913_v35 = vsub.f32 %v3238_v6, %v3268_v51  ;;  %v3914_v63 = vsub.f32 %v3246_v16, %v3288_v9  ;;  %v507_v36 = vsub.f32 %v3916_v17, %v3915_v31  ;;  %v2941_v56 = vld [vmem:[#allocation2 + $0x3c4] sm:$0xf]  ;;  %v2665_v16 = vld [vmem:[#allocation2 + $0x3d0] sm:$0xf0]  ;;  %1335 = vmatpush.bf16.msrb.mxu2 %v2440_v14 }
  0xdd   :  { %v2568_v45 = vor.u32 %v3514_v7, %v3512_v59  ;;  %v620_v43 = vmul.f32 %v3917_v10, %v598_v61  ;;  %v579_v48 = vmul.f32 %v3571_v40, %v3463_v41  ;;  %v2684_v6 = vor.u32 %v2945_v57, %v2681_v0  ;;  %v2837_v9 = vld [vmem:[#allocation2 + $0x84] sm:$0xf]  ;;  %v2249_v42 = vld [vmem:[#allocation2 + $0x90] sm:$0xf0] }
  0xde   :  { %v600_v58 = vmul.f32 %v547_v2, %v3913_v35  ;;  %v601_v52 = vmul.f32 %v557_v46, %v3914_v63  ;;  %1357 = vmatpush.bf16.msra.mxu0 %v2284_v44  ;;  %v2268_v51 = vor.u32 %v2841_v11, %v2265_v8  ;;  %v3587_v23 = vmul.f32 %v3918_v49, %v599_v1  ;;  %v2869_v47 = vld [vmem:[#allocation2 + $0x184] sm:$0xf]  ;;  %v2521_v28 = vld [vmem:[#allocation2 + $0x2b0] sm:$0xf0] }
  0xdf   :  { %v603_v27 = vmul.f32 %v577_v5, %v507_v36  ;;  %1371 = vmatpush.bf16.msra.mxu1 %v2412_v15  ;;  %v2396_v19 = vor.u32 %v2873_v39, %v2393_v20  ;;  %v624_v61 = vmul.f32 %v3917_v10, %v602_v30  ;;  %v580_v53 = vmul.f32 %v3571_v40, %v579_v48  ;;  %v2905_v7 = vld [vmem:[#allocation2 + $0x2a4] sm:$0xf]  ;;  %v3919_v21 = vld [vmem:[#allocation21_spill] sm:$0xff] }
  0xe0   :  { %1384 = vmatpush.bf16.msra.mxu2 %v2556_v34  ;;  %v2540_v59 = vor.u32 %v2909_v37, %v2537_v32  ;;  %v636_v13 = vperm.slane %v628_v33, 1  ;;  %v3592_v2 = vmul.f32 %v3530_v18, %v600_v58  ;;  %v3595_v1 = vmul.f32 %v3553_v4, %v601_v52  ;;  %1349 = vmatpush.bf16.msrb.mxu3 %v2568_v45  ;;  %v2937_v24 = vld [vmem:[#allocation2 + $0x3a4] sm:$0xf]  ;;  %v2649_v62 = vld [vmem:[#allocation2 + $0x3b0] sm:$0xf0]  ;;  %v3600_v44 = vpop.eup %3009 }
  0xe1   :  { %v508_v25 = vsub.f32 %v3920_v50, %v3919_v21  ;;  %v629_v46 = vperm.slane %v3302_v26, 5  ;;  %v581_v57 = vmul.f32 0.5, %v580_v53  ;;  %vm584_vm5 = vweird.f32 %v3463_v41  ;;  %v2833_v29 = vld [vmem:[#allocation2 + $0x64] sm:$0xf]  ;;  %v2233_v30 = vld [vmem:[#allocation2 + $0x70] sm:$0xf0] }
  0xe2   :  { %1358 = vmatpush.bf16.msra.mxu0 %v2268_v51  ;;  %v2668_v0 = vor.u32 %v2941_v56, %v2665_v16  ;;  %v2252_v3 = vor.u32 %v2837_v9, %v2249_v42  ;;  %v625_v22 = vmul.f32 %v3918_v49, %v603_v27  ;;  %vm585_vm6 = vweird.f32 %v3571_v40  ;;  %v2865_v14 = vld [vmem:[#allocation2 + $0x164] sm:$0xf]  ;;  %v2361_v11 = vld [vmem:[#allocation2 + $0x170] sm:$0xf0] }
  0xe3   :  { %v589_v15 = vmul.f32 %v3600_v44, %v3547_v54  ;;  %1372 = vmatpush.bf16.msra.mxu1 %v2396_v19  ;;  %v2380_v26 = vor.u32 %v2869_v47, %v2377_v38  ;;  %v582_v8 = vsub.f32 1.5, %v581_v57  ;;  %v2524_v5 = vor.u32 %v2905_v7, %v2521_v28  ;;  %v2901_v34 = vld [vmem:[#allocation2 + $0x284] sm:$0xf]  ;;  %v2505_v39 = vld [vmem:[#allocation2 + $0x290] sm:$0xf0]  ;;  %vm3613_vm7 = vmor %vm584_vm5, %vm585_vm6 }
  0xe4   :  { %1398 = vmatpush.bf16.msra.mxu3 %v2684_v6  ;;  %1385 = vmatpush.bf16.msra.mxu2 %v2540_v59  ;;  %v640_v20 = vadd.f32 %v636_v13, %v620_v43  ;;  %v644_v33 = vadd.f32 %v636_v13, %v624_v61  ;;  %v2652_v58 = vor.u32 %v2937_v24, %v2649_v62  ;;  %v2933_v52 = vld [vmem:[#allocation2 + $0x384] sm:$0xf]  ;;  %v2633_v31 = vld [vmem:[#allocation2 + $0x390] sm:$0xf0]  ;;  %v637_v17 = vperm.slane %v629_v46, 1 }
  0xe5   :  { %v590_v35 = vmul.f32 %v3600_v44, %v589_v15  ;;  %v2236_v63 = vor.u32 %v2833_v29, %v2233_v30  ;;  %v583_v36 = vmul.f32 %v3571_v40, %v582_v8  ;;  %v2364_v45 = vor.u32 %v2865_v14, %v2361_v11  ;;  %v2829_v37 = vld [vmem:[#allocation2 + $0x44] sm:$0xf]  ;;  %v2217_v32 = vld [vmem:[#allocation2 + $0x50] sm:$0xf0] }
  0xe6   :  { %1359 = vmatpush.bf16.msra.mxu0 %v2252_v3  ;;  %v648_v10 = vmax.f32 %v640_v20, 0.0  ;;  %v652_v48 = vmax.f32 %v644_v33, 0.0  ;;  %v2508_v51 = vor.u32 %v2901_v34, %v2505_v39  ;;  %v2861_v56 = vld [vmem:[#allocation2 + $0x144] sm:$0xf]  ;;  %v2345_v16 = vld [vmem:[#allocation2 + $0x150] sm:$0xf0]  ;;  %v641_v9 = vadd.f32 %v637_v17, %v3587_v23 }
  0xe7   :  { %v591_v6 = vmul.f32 0.5, %v590_v35  ;;  %1373 = vmatpush.bf16.msra.mxu1 %v2380_v26  ;;  %v645_v49 = vadd.f32 %v637_v17, %v625_v22  ;;  %v587_v27 = vsel %vm3613_vm7, %v3571_v40, %v583_v36  ;;  %vm595_vm8 = vweird.f32 %v3600_v44  ;;  %v2897_v19 = vld [vmem:[#allocation2 + $0x264] sm:$0xf]  ;;  %v2489_v42 = vld [vmem:[#allocation2 + $0x270] sm:$0xf0]  ;;  %v3923_v3 = vld [vmem:[#allocation20_spill] sm:$0xff] }
  0xe8   :  { %1399 = vmatpush.bf16.msra.mxu3 %v2668_v0  ;;  %1386 = vmatpush.bf16.msra.mxu2 %v2524_v5  ;;  %v2636_v41 = vor.u32 %v2933_v52, %v2633_v31  ;;  %v2929_v47 = vld [vmem:[#allocation2 + $0x364] sm:$0xf]  ;;  %v3622_v38 = vpack.c.bf16 %v652_v48, %v648_v10  ;;  %v604_v61 = vmul.f32 %v587_v27, %v508_v25  ;;  %v2617_v59 = vld [vmem:[#allocation2 + $0x370] sm:$0xf0]  ;;  %v649_v7 = vmax.f32 %v641_v9, 0.0 }
  0xe9   :  { %v592_v53 = vsub.f32 1.5, %v591_v6  ;;  %v653_v28 = vmax.f32 %v645_v49, 0.0  ;;  %v2220_v23 = vor.u32 %v2829_v37, %v2217_v32  ;;  %v2348_v13 = vor.u32 %v2861_v56, %v2345_v16  ;;  %v2825_v21 = vld [vmem:[#allocation2 + $0x24] sm:$0xf]  ;;  %v2201_v40 = vld [vmem:[#allocation2 + $0x30] sm:$0xf0] }
  0xea   :  { %1360 = vmatpush.bf16.msra.mxu0 %v2236_v63  ;;  %v630_v50 = vperm.slane %v3331_v60, 1  ;;  %v631_v24 = vperm.slane %v3331_v60, 5  ;;  %v626_v62 = vmul.f32 %v3530_v18, %v604_v61  ;;  %vm594_vm9 = vweird.f32 %v3547_v54  ;;  %v2857_v25 = vld [vmem:[#allocation2 + $0x124] sm:$0xf]  ;;  %v2329_v57 = vld [vmem:[#allocation2 + $0x130] sm:$0xf0] }
  0xeb   :  { %v593_v46 = vmul.f32 %v3600_v44, %v592_v53  ;;  %1374 = vmatpush.bf16.msra.mxu1 %v2364_v45  ;;  %1308 = vmatmul.bf16.vlgmr.msrb.gmra.mxu0 %v3622_v38  ;;  %v3630_v0 = vpack.c.bf16 %v653_v28, %v649_v7  ;;  %v509_v29 = vsub.f32 %v3923_v3, %v3448_v55  ;;  %vm596_vm10 = vmor %vm594_vm9, %vm595_vm8  ;;  %v2893_v18 = vld [vmem:[#allocation2 + $0x244] sm:$0xf]  ;;  %v2473_v30 = vld [vmem:[#allocation2 + $0x250] sm:$0xf0] }
  0xec   :  { %1400 = vmatpush.bf16.msra.mxu3 %v2652_v58  ;;  %1387 = vmatpush.bf16.msra.mxu2 %v2508_v51  ;;  %v2492_v60 = vor.u32 %v2897_v19, %v2489_v42  ;;  %v638_v22 = vperm.slane %v630_v50, 1  ;;  %v639_v15 = vperm.slane %v631_v24, 1  ;;  %v2620_v26 = vor.u32 %v2929_v47, %v2617_v59  ;;  %v2925_v11 = vld [vmem:[#allocation2 + $0x344] sm:$0xf]  ;;  %v2601_v55 = vld [vmem:[#allocation2 + $0x350] sm:$0xf0] }
  0xed   :  { %v597_v54 = vsel %vm596_vm10, %v3600_v44, %v593_v46  ;;  %v2204_v14 = vor.u32 %v2825_v21, %v2201_v40  ;;  %1322 = vmatmul.bf16.vlgmr.msrb.gmra.mxu1 %v3630_v0  ;;  %v2821_v5 = vld [vmem:[#allocation2 + $0x4] sm:$0xf]  ;;  %v2185_v34 = vld [vmem:[#allocation2 + $0x10] sm:$0xf0]  ;;  %v2332_v33 = vor.u32 %v2857_v25, %v2329_v57  ;;  %v2476_v35 = vor.u32 %v2893_v18, %v2473_v30  ;;  %v2303_v44 = vld [vmem:[#allocation2 + $0xe8] sm:$0xf] }
  0xee   :  { %v605_v8 = vmul.f32 %v597_v54, %v509_v29  ;;  %1361 = vmatpush.bf16.msra.mxu0 %v2220_v23  ;;  %v642_v39 = vadd.f32 %v638_v22, %v3592_v2  ;;  %v646_v20 = vadd.f32 %v638_v22, %v626_v62  ;;  %v2853_v58 = vld [vmem:[#allocation2 + $0x104] sm:$0xf]  ;;  %v2313_v63 = vld [vmem:[#allocation2 + $0x110] sm:$0xf0]  ;;  %v2852_v31 = vld [vmem:[#allocation2 + $0xf4] sm:$0xf0]  ;;  %v643_v37 = vadd.f32 %v639_v15, %v3595_v1 }
  0xef   :  { %1375 = vmatpush.bf16.msra.mxu1 %v2348_v13  ;;  %v2431_v17 = vld [vmem:[#allocation2 + $0x1e8] sm:$0xf]  ;;  %v2604_v32 = vor.u32 %v2925_v11, %v2601_v55  ;;  %v2884_v10 = vld [vmem:[#allocation2 + $0x1f4] sm:$0xf0]  ;;  %v2889_v48 = vld [vmem:[#allocation2 + $0x224] sm:$0xf]  ;;  %v2188_v43 = vor.u32 %v2821_v5, %v2185_v34  ;;  %v2316_v56 = vor.u32 %v2853_v58, %v2313_v63 }
  0xf0   :  { %1401 = vmatpush.bf16.msra.mxu3 %v2636_v41  ;;  %v627_v52 = vmul.f32 %v3553_v4, %v605_v8  ;;  %1388 = vmatpush.bf16.msra.mxu2 %v2492_v60  ;;  %v650_v36 = vmax.f32 %v642_v39, 0.0  ;;  %v654_v45 = vmax.f32 %v646_v20, 0.0  ;;  %v2457_v2 = vld [vmem:[#allocation2 + $0x230] sm:$0xf0]  ;;  %v2304_v4 = vor.u32 %v2852_v31, %v2303_v44  ;;  %v2921_v16 = vld [vmem:[#allocation2 + $0x324] sm:$0xf] }
  0xf1   :  { %v2585_v9 = vld [vmem:[#allocation2 + $0x330] sm:$0xf0]  ;;  %v2287_v49 = vld [vmem:[#allocation2 + $0xc8] sm:$0xf]  ;;  %v2432_v27 = vor.u32 %v2884_v10, %v2431_v17  ;;  %v2460_v41 = vor.u32 %v2889_v48, %v2457_v2  ;;  %v2848_v1 = vld [vmem:[#allocation2 + $0xd4] sm:$0xf0] }
  0xf2   :  { %1362 = vmatpush.bf16.msra.mxu0 %v2204_v14  ;;  %v3641_v6 = vpack.c.bf16 %v654_v45, %v650_v36  ;;  %v647_v51 = vadd.f32 %v639_v15, %v627_v52  ;;  %v2415_v19 = vld [vmem:[#allocation2 + $0x1c8] sm:$0xf]  ;;  %v651_v42 = vmax.f32 %v643_v37, 0.0  ;;  %v2880_v61 = vld [vmem:[#allocation2 + $0x1d4] sm:$0xf0]  ;;  %v2588_v7 = vor.u32 %v2921_v16, %v2585_v9 }
  0xf3   :  { %1376 = vmatpush.bf16.msra.mxu1 %v2332_v33  ;;  %v2885_v53 = vld [vmem:[#allocation2 + $0x204] sm:$0xf]  ;;  %v2441_v59 = vld [vmem:[#allocation2 + $0x210] sm:$0xf0]  ;;  %v2559_v23 = vld [vmem:[#allocation2 + $0x2e8] sm:$0xf]  ;;  %v2288_v21 = vor.u32 %v2848_v1, %v2287_v49  ;;  %v2416_v62 = vor.u32 %v2880_v61, %v2415_v19 }
  0xf4   :  { %1402 = vmatpush.bf16.msra.mxu3 %v2620_v26  ;;  %1389 = vmatpush.bf16.msra.mxu2 %v2476_v35  ;;  %v655_v47 = vmax.f32 %v647_v51, 0.0  ;;  %v2916_v13 = vld [vmem:[#allocation2 + $0x2f4] sm:$0xf0]  ;;  %v2917_v40 = vld [vmem:[#allocation2 + $0x304] sm:$0xf]  ;;  %v2444_v46 = vor.u32 %v2885_v53, %v2441_v59 }
  0xf5   :  { %1336 = vmatmul.bf16.vlgmr.msrb.gmra.mxu2 %v3641_v6  ;;  %v2569_v50 = vld [vmem:[#allocation2 + $0x310] sm:$0xf0]  ;;  %v2687_v24 = vld [vmem:[#allocation2 + $0x3e8] sm:$0xf]  ;;  %v2948_v25 = vld [vmem:[#allocation2 + $0x3f4] sm:$0xf0]  ;;  %v2560_v29 = vor.u32 %v2916_v13, %v2559_v23 }
  0xf6   :  { %1363 = vmatpush.bf16.msra.mxu0 %v2188_v43  ;;  %v3644_v28 = vpack.c.bf16 %v655_v47, %v651_v42  ;;  %v2271_v57 = vld [vmem:[#allocation2 + $0xa8] sm:$0xf]  ;;  %v2844_v3 = vld [vmem:[#allocation2 + $0xb4] sm:$0xf0]  ;;  %v2572_v30 = vor.u32 %v2917_v40, %v2569_v50  ;;  %v2688_v54 = vor.u32 %v2948_v25, %v2687_v24 }
  0xf7   :  { %1377 = vmatpush.bf16.msra.mxu1 %v2316_v56  ;;  %v2399_v60 = vld [vmem:[#allocation2 + $0x1a8] sm:$0xf]  ;;  %v2876_v18 = vld [vmem:[#allocation2 + $0x1b4] sm:$0xf0]  ;;  %v2272_v26 = vor.u32 %v2844_v3, %v2271_v57 }
  0xf8   :  { %1403 = vmatpush.bf16.msra.mxu3 %v2604_v32  ;;  %1390 = vmatpush.bf16.msra.mxu2 %v2460_v41  ;;  %v2543_v22 = vld [vmem:[#allocation2 + $0x2c8] sm:$0xf]  ;;  %v2912_v15 = vld [vmem:[#allocation2 + $0x2d4] sm:$0xf0]  ;;  %v2400_v11 = vor.u32 %v2876_v18, %v2399_v60 }
  0xf9   :  { %1350 = vmatmul.bf16.vlgmr.msrb.gmra.mxu3 %v3644_v28  ;;  %v2671_v14 = vld [vmem:[#allocation2 + $0x3c8] sm:$0xf]  ;;  %v2944_v8 = vld [vmem:[#allocation2 + $0x3d4] sm:$0xf0]  ;;  %v2544_v34 = vor.u32 %v2912_v15, %v2543_v22  ;;  %v2850_v15 = vld [vmem:[#allocation2 + $0xec] sm:$0xf] }
  0xfa   :  { %1412 = vmatpush.bf16.msrb.mxu0 %v2304_v4  ;;  %v2255_v55 = vld [vmem:[#allocation2 + $0x88] sm:$0xf]  ;;  %v2840_v5 = vld [vmem:[#allocation2 + $0x94] sm:$0xf0]  ;;  %v2672_v58 = vor.u32 %v2944_v8, %v2671_v14  ;;  %v2433_v14 = vld [vmem:[#allocation2 + $0x1f8] sm:$0xf0] }
  0xfb   :  { %1426 = vmatpush.bf16.msrb.mxu1 %v2432_v27  ;;  %v2383_v39 = vld [vmem:[#allocation2 + $0x188] sm:$0xf]  ;;  %v2872_v20 = vld [vmem:[#allocation2 + $0x194] sm:$0xf0]  ;;  %1364 = vmatmul.bf16.vlgmr.msra.gmra.mxu0 %v3622_v38  ;;  %v2256_v63 = vor.u32 %v2840_v5, %v2255_v55 }
  0xfc   :  { %1404 = vmatpush.bf16.msra.mxu3 %v2588_v7  ;;  %1391 = vmatpush.bf16.msra.mxu2 %v2444_v46  ;;  %v2527_v33 = vld [vmem:[#allocation2 + $0x2a8] sm:$0xf]  ;;  %v2908_v35 = vld [vmem:[#allocation2 + $0x2b4] sm:$0xf0]  ;;  %v2384_v52 = vor.u32 %v2872_v20, %v2383_v39 }
  0xfd   :  { %1378 = vmatmul.bf16.vlgmr.msra.gmra.mxu1 %v3630_v0  ;;  %v2655_v44 = vld [vmem:[#allocation2 + $0x3a8] sm:$0xf]  ;;  %v2940_v31 = vld [vmem:[#allocation2 + $0x3b4] sm:$0xf0]  ;;  %v2528_v45 = vor.u32 %v2908_v35, %v2527_v33 }
  0xfe   :  { %1413 = vmatpush.bf16.msrb.mxu0 %v2288_v21  ;;  %v2239_v17 = vld [vmem:[#allocation2 + $0x68] sm:$0xf]  ;;  %v2836_v36 = vld [vmem:[#allocation2 + $0x74] sm:$0xf0]  ;;  %v2656_v2 = vor.u32 %v2940_v31, %v2655_v44  ;;  %v2289_v44 = vld [vmem:[#allocation2 + $0xd8] sm:$0xf0] }
  0xff   :  { %1427 = vmatpush.bf16.msrb.mxu1 %v2416_v62  ;;  %v2367_v37 = vld [vmem:[#allocation2 + $0x168] sm:$0xf]  ;;  %v2868_v32 = vld [vmem:[#allocation2 + $0x174] sm:$0xf0]  ;;  %v2240_v43 = vor.u32 %v2836_v36, %v2239_v17  ;;  %v2417_v31 = vld [vmem:[#allocation2 + $0x1d8] sm:$0xf0] }
 0x100   :  { %1440 = vmatpush.bf16.msrb.mxu2 %v2560_v29  ;;  %1405 = vmatpush.bf16.msra.mxu3 %v2572_v30  ;;  %v2511_v10 = vld [vmem:[#allocation2 + $0x288] sm:$0xf]  ;;  %v2904_v48 = vld [vmem:[#allocation2 + $0x294] sm:$0xf0]  ;;  %v2368_v56 = vor.u32 %v2868_v32, %v2367_v37  ;;  %v2914_v37 = vld [vmem:[#allocation2 + $0x2ec] sm:$0xf] }
 0x101   :  { %v2639_v51 = vld [vmem:[#allocation2 + $0x388] sm:$0xf]  ;;  %v2936_v4 = vld [vmem:[#allocation2 + $0x394] sm:$0xf0]  ;;  %v2512_v49 = vor.u32 %v2904_v48, %v2511_v10  ;;  %v2561_v32 = vld [vmem:[#allocation2 + $0x2f8] sm:$0xf0] }
 0x102   :  { %1414 = vmatpush.bf16.msrb.mxu0 %v2272_v26  ;;  %v2223_v16 = vld [vmem:[#allocation2 + $0x48] sm:$0xf]  ;;  %v2832_v9 = vld [vmem:[#allocation2 + $0x54] sm:$0xf0]  ;;  %v2640_v42 = vor.u32 %v2936_v4, %v2639_v51  ;;  %v2882_v26 = vld [vmem:[#allocation2 + $0x1ec] sm:$0xf] }
 0x103   :  { %1428 = vmatpush.bf16.msrb.mxu1 %v2400_v11  ;;  %v2351_v27 = vld [vmem:[#allocation2 + $0x148] sm:$0xf]  ;;  %v2864_v41 = vld [vmem:[#allocation2 + $0x154] sm:$0xf0]  ;;  %v2224_v47 = vor.u32 %v2832_v9, %v2223_v16  ;;  %v2436_v35 = vor.u32 %v2882_v26, %v2433_v14  ;;  %v2689_v4 = vld [vmem:[#allocation2 + $0x3f8] sm:$0xf0] }
 0x104   :  { %1454 = vmatpush.bf16.msrb.mxu3 %v2688_v54  ;;  %1441 = vmatpush.bf16.msrb.mxu2 %v2544_v34  ;;  %v2495_v1 = vld [vmem:[#allocation2 + $0x268] sm:$0xf]  ;;  %v2900_v19 = vld [vmem:[#allocation2 + $0x274] sm:$0xf0]  ;;  %v2352_v53 = vor.u32 %v2864_v41, %v2351_v27  ;;  %v2305_v54 = vld [vmem:[#allocation2 + $0xf8] sm:$0xf0] }
 0x105   :  { %1392 = vmatmul.bf16.vlgmr.msra.gmra.mxu2 %v3641_v6  ;;  %v2623_v61 = vld [vmem:[#allocation2 + $0x368] sm:$0xf]  ;;  %v2932_v59 = vld [vmem:[#allocation2 + $0x374] sm:$0xf0]  ;;  %v2496_v13 = vor.u32 %v2900_v19, %v2495_v1  ;;  %v2308_v39 = vor.u32 %v2850_v15, %v2305_v54  ;;  %v2842_v16 = vld [vmem:[#allocation2 + $0xac] sm:$0xf] }
 0x106   :  { %1415 = vmatpush.bf16.msrb.mxu0 %v2256_v63  ;;  %v2207_v7 = vld [vmem:[#allocation2 + $0x28] sm:$0xf]  ;;  %v2828_v23 = vld [vmem:[#allocation2 + $0x34] sm:$0xf0]  ;;  %v2624_v62 = vor.u32 %v2932_v59, %v2623_v61  ;;  %v2846_v63 = vld [vmem:[#allocation2 + $0xcc] sm:$0xf] }
 0x107   :  { %1429 = vmatpush.bf16.msrb.mxu1 %v2384_v52  ;;  %v2335_v21 = vld [vmem:[#allocation2 + $0x128] sm:$0xf]  ;;  %v2860_v40 = vld [vmem:[#allocation2 + $0x134] sm:$0xf0]  ;;  %v2208_v46 = vor.u32 %v2828_v23, %v2207_v7  ;;  %v2878_v52 = vld [vmem:[#allocation2 + $0x1cc] sm:$0xf]  ;;  %v2292_v10 = vor.u32 %v2846_v63, %v2289_v44 }
 0x108   :  { %1455 = vmatpush.bf16.msrb.mxu3 %v2672_v58  ;;  %1442 = vmatpush.bf16.msrb.mxu2 %v2528_v45  ;;  %v2479_v50 = vld [vmem:[#allocation2 + $0x248] sm:$0xf]  ;;  %v2896_v24 = vld [vmem:[#allocation2 + $0x254] sm:$0xf0]  ;;  %v2336_v29 = vor.u32 %v2860_v40, %v2335_v21  ;;  %v2420_v51 = vor.u32 %v2878_v52, %v2417_v31  ;;  %v2273_v9 = vld [vmem:[#allocation2 + $0xb8] sm:$0xf0] }
 0x109   :  { %1406 = vmatmul.bf16.vlgmr.msra.gmra.mxu3 %v3644_v28  ;;  %v2607_v25 = vld [vmem:[#allocation2 + $0x348] sm:$0xf]  ;;  %v2928_v57 = vld [vmem:[#allocation2 + $0x354] sm:$0xf0]  ;;  %v2480_v22 = vor.u32 %v2896_v24, %v2479_v50  ;;  %v2874_v27 = vld [vmem:[#allocation2 + $0x1ac] sm:$0xf]  ;;  %v2276_v61 = vor.u32 %v2842_v16, %v2273_v9 }
 0x10a   :  { %1416 = vmatpush.bf16.msrb.mxu0 %v2240_v43  ;;  %v2191_v3 = vld [vmem:[#allocation2 + $0x8] sm:$0xf]  ;;  %v2824_v60 = vld [vmem:[#allocation2 + $0x14] sm:$0xf0]  ;;  %v2608_v55 = vor.u32 %v2928_v57, %v2607_v25  ;;  %v2946_v43 = vld [vmem:[#allocation2 + $0x3ec] sm:$0xf] }
 0x10b   :  { %1430 = vmatpush.bf16.msrb.mxu1 %v2368_v56  ;;  %v2319_v18 = vld [vmem:[#allocation2 + $0x108] sm:$0xf]  ;;  %v2856_v30 = vld [vmem:[#allocation2 + $0x114] sm:$0xf0]  ;;  %v2192_v5 = vor.u32 %v2824_v60, %v2191_v3  ;;  %v2401_v41 = vld [vmem:[#allocation2 + $0x1b8] sm:$0xf0] }
 0x10c   :  { %1456 = vmatpush.bf16.msrb.mxu3 %v2656_v2  ;;  %1443 = vmatpush.bf16.msrb.mxu2 %v2512_v49  ;;  %v2463_v11 = vld [vmem:[#allocation2 + $0x228] sm:$0xf]  ;;  %v2892_v8 = vld [vmem:[#allocation2 + $0x234] sm:$0xf0]  ;;  %v2320_v34 = vor.u32 %v2856_v30, %v2319_v18  ;;  %v2564_v49 = vor.u32 %v2914_v37, %v2561_v32  ;;  %v2910_v19 = vld [vmem:[#allocation2 + $0x2cc] sm:$0xf]  ;;  %v2404_v59 = vor.u32 %v2874_v27, %v2401_v41 }
 0x10d   :  { %v2591_v20 = vld [vmem:[#allocation2 + $0x328] sm:$0xf]  ;;  %v2924_v33 = vld [vmem:[#allocation2 + $0x334] sm:$0xf0]  ;;  %v2464_v58 = vor.u32 %v2892_v8, %v2463_v11  ;;  %v2673_v7 = vld [vmem:[#allocation2 + $0x3d8] sm:$0xf0] }
 0x10e   :  { %1417 = vmatpush.bf16.msrb.mxu0 %v2224_v47  ;;  %v2447_v17 = vld [vmem:[#allocation2 + $0x208] sm:$0xf]  ;;  %v2888_v36 = vld [vmem:[#allocation2 + $0x214] sm:$0xf0]  ;;  %v2592_v45 = vor.u32 %v2924_v33, %v2591_v20  ;;  %v2692_v47 = vor.u32 %v2946_v43, %v2689_v4  ;;  %v2838_v23 = vld [vmem:[#allocation2 + $0x8c] sm:$0xf] }
 0x10f   :  { %1431 = vmatpush.bf16.msrb.mxu1 %v2352_v53  ;;  %v2575_v48 = vld [vmem:[#allocation2 + $0x308] sm:$0xf]  ;;  %v2920_v2 = vld [vmem:[#allocation2 + $0x314] sm:$0xf0]  ;;  %v2448_v56 = vor.u32 %v2888_v36, %v2447_v17  ;;  %v2942_v53 = vld [vmem:[#allocation2 + $0x3cc] sm:$0xf] }
 0x110   :  { %1457 = vmatpush.bf16.msrb.mxu3 %v2640_v42  ;;  %1444 = vmatpush.bf16.msrb.mxu2 %v2496_v13  ;;  %v2576_v1 = vor.u32 %v2920_v2, %v2575_v48  ;;  %v2545_v42 = vld [vmem:[#allocation2 + $0x2d8] sm:$0xf0]  ;;  %v2870_v40 = vld [vmem:[#allocation2 + $0x18c] sm:$0xf] }
 0x111   :  { %v2257_v13 = vld [vmem:[#allocation2 + $0x98] sm:$0xf0]  ;;  %v2548_v21 = vor.u32 %v2910_v19, %v2545_v42  ;;  %v2906_v24 = vld [vmem:[#allocation2 + $0x2ac] sm:$0xf] }
 0x112   :  { %1418 = vmatpush.bf16.msrb.mxu0 %v2208_v46  ;;  %v2385_v50 = vld [vmem:[#allocation2 + $0x198] sm:$0xf0]  ;;  %v2676_v46 = vor.u32 %v2942_v53, %v2673_v7  ;;  %v2260_v25 = vor.u32 %v2838_v23, %v2257_v13  ;;  %v2938_v57 = vld [vmem:[#allocation2 + $0x3ac] sm:$0xf] }
 0x113   :  { %1432 = vmatpush.bf16.msrb.mxu1 %v2336_v29  ;;  %v2388_v3 = vor.u32 %v2870_v40, %v2385_v50  ;;  %v2657_v29 = vld [vmem:[#allocation2 + $0x3b8] sm:$0xf0]  ;;  %v2834_v60 = vld [vmem:[#allocation2 + $0x6c] sm:$0xf] }
 0x114   :  { %1458 = vmatpush.bf16.msrb.mxu3 %v2624_v62  ;;  %1445 = vmatpush.bf16.msrb.mxu2 %v2480_v22  ;;  %v2529_v62 = vld [vmem:[#allocation2 + $0x2b8] sm:$0xf0]  ;;  %v2866_v22 = vld [vmem:[#allocation2 + $0x16c] sm:$0xf]  ;;  %v2660_v14 = vor.u32 %v2938_v57, %v2657_v29 }
 0x115   :  { %v2241_v18 = vld [vmem:[#allocation2 + $0x78] sm:$0xf0]  ;;  %v2532_v30 = vor.u32 %v2906_v24, %v2529_v62  ;;  %v2902_v54 = vld [vmem:[#allocation2 + $0x28c] sm:$0xf] }
 0x116   :  { %1419 = vmatpush.bf16.msrb.mxu0 %v2192_v5  ;;  %v2369_v15 = vld [vmem:[#allocation2 + $0x178] sm:$0xf0]  ;;  %v2244_v11 = vor.u32 %v2834_v60, %v2241_v18  ;;  %v2934_v8 = vld [vmem:[#allocation2 + $0x38c] sm:$0xf] }
 0x117   :  { %1433 = vmatpush.bf16.msrb.mxu1 %v2320_v34  ;;  %v2513_v26 = vld [vmem:[#allocation2 + $0x298] sm:$0xf0]  ;;  %v2830_v34 = vld [vmem:[#allocation2 + $0x4c] sm:$0xf] }
 0x118   :  { %1459 = vmatpush.bf16.msrb.mxu3 %v2608_v55  ;;  %1446 = vmatpush.bf16.msrb.mxu2 %v2464_v58  ;;  %v2372_v55 = vor.u32 %v2866_v22, %v2369_v15  ;;  %v2641_v5 = vld [vmem:[#allocation2 + $0x398] sm:$0xf0]  ;;  %v2516_v20 = vor.u32 %v2902_v54, %v2513_v26  ;;  %v2862_v33 = vld [vmem:[#allocation2 + $0x14c] sm:$0xf] }
 0x119   :  { %1420 = vmatmul.bf16.vlgmr.msrb.gmra.mxu0 %v3622_v38  ;;  %v2898_v58 = vld [vmem:[#allocation2 + $0x26c] sm:$0xf]  ;;  %v2497_v63 = vld [vmem:[#allocation2 + $0x278] sm:$0xf0]  ;;  %v2644_v44 = vor.u32 %v2934_v8, %v2641_v5 }
 0x11a   :  { %1468 = vmatpush.bf16.msra.mxu0 %v2308_v39  ;;  %1434 = vmatmul.bf16.vlgmr.msrb.gmra.mxu1 %v3630_v0  ;;  %v2225_v39 = vld [vmem:[#allocation2 + $0x58] sm:$0xf0]  ;;  %v2930_v31 = vld [vmem:[#allocation2 + $0x36c] sm:$0xf]  ;;  %v2500_v32 = vor.u32 %v2898_v58, %v2497_v63 }
 0x11b   :  { %1482 = vmatpush.bf16.msra.mxu1 %v2436_v35  ;;  %v2353_v35 = vld [vmem:[#allocation2 + $0x158] sm:$0xf0]  ;;  %v2228_v52 = vor.u32 %v2830_v34, %v2225_v39  ;;  %v2894_v2 = vld [vmem:[#allocation2 + $0x24c] sm:$0xf] }
 0x11c   :  { %1460 = vmatpush.bf16.msrb.mxu3 %v2592_v45  ;;  %1447 = vmatpush.bf16.msrb.mxu2 %v2448_v56  ;;  %v2356_v17 = vor.u32 %v2862_v33, %v2353_v35  ;;  %v2625_v36 = vld [vmem:[#allocation2 + $0x378] sm:$0xf0]  ;;  %v2826_v45 = vld [vmem:[#allocation2 + $0x2c] sm:$0xf]  ;;  %v2955_v33 = vld [vmem:[#allocation5 + $0x30] sm:$0xff] }
 0x11d   :  { %v2209_v37 = vld [vmem:[#allocation2 + $0x38] sm:$0xf0]  ;;  %v2926_v4 = vld [vmem:[#allocation2 + $0x34c] sm:$0xf] }
 0x11e   :  { %1469 = vmatpush.bf16.msra.mxu0 %v2292_v10  ;;  %v2858_v10 = vld [vmem:[#allocation2 + $0x12c] sm:$0xf]  ;;  %v2337_v48 = vld [vmem:[#allocation2 + $0x138] sm:$0xf0]  ;;  %v2212_v56 = vor.u32 %v2826_v45, %v2209_v37 }
 0x11f   :  { %1483 = vmatpush.bf16.msra.mxu1 %v2420_v51  ;;  %1448 = vmatmul.bf16.vlgmr.msrb.gmra.mxu2 %v3641_v6  ;;  %v2481_v43 = vld [vmem:[#allocation2 + $0x258] sm:$0xf0]  ;;  %v2628_v51 = vor.u32 %v2930_v31, %v2625_v36  ;;  %v2340_v16 = vor.u32 %v2858_v10, %v2337_v48  ;;  %v2890_v42 = vld [vmem:[#allocation2 + $0x22c] sm:$0xf] }
 0x120   :  { %1496 = vmatpush.bf16.msra.mxu2 %v2564_v49  ;;  %1461 = vmatpush.bf16.msrb.mxu3 %v2576_v1  ;;  %v2609_v9 = vld [vmem:[#allocation2 + $0x358] sm:$0xf0]  ;;  %v2822_v49 = vld [vmem:[#allocation2 + $0xc] sm:$0xf]  ;;  %v2484_v41 = vor.u32 %v2894_v2, %v2481_v43 }
 0x121   :  { %v2193_v27 = vld [vmem:[#allocation2 + $0x18] sm:$0xf0]  ;;  %v2854_v1 = vld [vmem:[#allocation2 + $0x10c] sm:$0xf] }
 0x122   :  { %1470 = vmatpush.bf16.msra.mxu0 %v2276_v61  ;;  %v2321_v19 = vld [vmem:[#allocation2 + $0x118] sm:$0xf0]  ;;  %v2612_v61 = vor.u32 %v2926_v4, %v2609_v9  ;;  %v2196_v53 = vor.u32 %v2822_v49, %v2193_v27  ;;  %v2922_v7 = vld [vmem:[#allocation2 + $0x32c] sm:$0xf]  ;;  %v2953_v49 = vld [vmem:[#allocation5 + $0x20] sm:$0xff] }
 0x123   :  { %1484 = vmatpush.bf16.msra.mxu1 %v2404_v59  ;;  %1462 = vmatmul.bf16.vlgmr.msrb.gmra.mxu3 %v3644_v28  ;;  %v2324_v59 = vor.u32 %v2854_v1, %v2321_v19  ;;  %v2593_v23 = vld [vmem:[#allocation2 + $0x338] sm:$0xf0]  ;;  %v2918_v24 = vld [vmem:[#allocation2 + $0x30c] sm:$0xf] }
 0x124   :  { %1510 = vmatpush.bf16.msra.mxu3 %v2692_v47  ;;  %1497 = vmatpush.bf16.msra.mxu2 %v2548_v21  ;;  %v2465_v47 = vld [vmem:[#allocation2 + $0x238] sm:$0xf0]  ;;  %v2886_v21 = vld [vmem:[#allocation2 + $0x20c] sm:$0xf]  ;;  %v2596_v50 = vor.u32 %v2922_v7, %v2593_v23 }
 0x125   :  { %v2468_v13 = vor.u32 %v2890_v42, %v2465_v47  ;;  %v2449_v40 = vld [vmem:[#allocation2 + $0x218] sm:$0xf0]  ;;  %v2954_v45 = vld [vmem:[#allocation5 + $0x28] sm:$0xff] }
 0x126   :  { %1471 = vmatpush.bf16.msra.mxu0 %v2260_v25  ;;  %v2577_v62 = vld [vmem:[#allocation2 + $0x318] sm:$0xf0] }
 0x127   :  { %1485 = vmatpush.bf16.msra.mxu1 %v2388_v3  ;;  %v2580_v25 = vor.u32 %v2918_v24, %v2577_v62 }
 0x128   :  { %1511 = vmatpush.bf16.msra.mxu3 %v2676_v46  ;;  %1498 = vmatpush.bf16.msra.mxu2 %v2532_v30  ;;  %v2452_v46 = vor.u32 %v2886_v21, %v2449_v40  ;;  %v2952_v21 = vld [vmem:[#allocation5 + $0x18] sm:$0xff] }
 0x129   :  { %v2964_v40 = vld [vmem:[#allocation5 + $0x78] sm:$0xff] }
 0x12a   :  { %1472 = vmatpush.bf16.msra.mxu0 %v2244_v11 }
 0x12b   :  { %1486 = vmatpush.bf16.msra.mxu1 %v2372_v55 }
 0x12c   :  { %1512 = vmatpush.bf16.msra.mxu3 %v2660_v14  ;;  %1499 = vmatpush.bf16.msra.mxu2 %v2516_v20 }
 0x12e   :  { %1473 = vmatpush.bf16.msra.mxu0 %v2228_v52 }
 0x12f   :  { %1487 = vmatpush.bf16.msra.mxu1 %v2356_v17 }
 0x130   :  { %1513 = vmatpush.bf16.msra.mxu3 %v2644_v44  ;;  %1500 = vmatpush.bf16.msra.mxu2 %v2500_v32 }
 0x132   :  { %1474 = vmatpush.bf16.msra.mxu0 %v2212_v56 }
 0x133   :  { %1488 = vmatpush.bf16.msra.mxu1 %v2340_v16 }
 0x134   :  { %1514 = vmatpush.bf16.msra.mxu3 %v2628_v51  ;;  %1501 = vmatpush.bf16.msra.mxu2 %v2484_v41 }
 0x136   :  { %1475 = vmatpush.bf16.msra.mxu0 %v2196_v53 }
 0x137   :  { %1489 = vmatpush.bf16.msra.mxu1 %v2324_v59 }
 0x138   :  { %1515 = vmatpush.bf16.msra.mxu3 %v2612_v61  ;;  %1502 = vmatpush.bf16.msra.mxu2 %v2468_v13 }
 0x139   :  { %1476 = vmatmul.bf16.vlgmr.msra.gmra.mxu0 %v3622_v38 }
 0x13a   :  { %1490 = vmatmul.bf16.vlgmr.msra.gmra.mxu1 %v3630_v0 }
 0x13b   :  { %2033 = vmatpush.bf16.msrb.mxu1 %v2964_v40 }
 0x13c   :  { %1516 = vmatpush.bf16.msra.mxu3 %v2596_v50  ;;  %1503 = vmatpush.bf16.msra.mxu2 %v2452_v46 }
 0x13f   :  { %1504 = vmatmul.bf16.vlgmr.msra.gmra.mxu2 %v3641_v6  ;;  %v2956_v6 = vld [vmem:[#allocation5 + $0x38] sm:$0xff] }
 0x140   :  { %1517 = vmatpush.bf16.msra.mxu3 %v2580_v25  ;;  %2019 = vmatpush.bf16.msrb.mxu0 %v2956_v6 }
 0x143   :  { %1518 = vmatmul.bf16.vlgmr.msra.gmra.mxu3 %v3644_v28 }
 0x144   :  { %2020 = vmatpush.bf16.msrb.mxu0 %v2955_v33 }
 0x148   :  { %2021 = vmatpush.bf16.msrb.mxu0 %v2954_v45 }
 0x14c   :  { %2022 = vmatpush.bf16.msrb.mxu0 %v2953_v49 }
 0x150   :  { %2023 = vmatpush.bf16.msrb.mxu0 %v2952_v21 }
 0x168   :  { %v1309_v57 = vpop.f32.mrf.mxu0 }
 0x16a   :  { %v1323_v3 = vpop.f32.mrf.mxu1 }
 0x16b   :  { %v1324_v29 = vadd.f32 %v1323_v3, %v1309_v57 }
 0x170   :  { %v1311_v18 = vpop.f32.mrf.mxu0 }
 0x172   :  { %v1325_v22 = vpop.f32.mrf.mxu1 }
 0x173   :  { %v1326_v38 = vadd.f32 %v1325_v22, %v1311_v18 }
 0x178   :  { %v1337_v60 = vpop.f32.mrf.mxu2  ;;  %v1365_v34 = vpop.f32.mrf.mxu0 }
 0x179   :  { %v1338_v30 = vadd.f32 %v1337_v60, %v1324_v29 }
 0x17a   :  { %v1379_v39 = vpop.f32.mrf.mxu1 }
 0x17b   :  { %v1380_v36 = vadd.f32 %v1379_v39, %v1365_v34  ;;  %v2950_v39 = vld [vmem:[#allocation5 + $0x8] sm:$0xff] }
 0x17c   :  { %v1351_v15 = vpop.f32.mrf.mxu3 }
 0x17d   :  { %v3659_v54 = vadd.f32 %v1351_v15, %v1338_v30 }
 0x17f   :  { %v1524_v0 = vrot.slane %v3659_v54, 4  ;;  %v1580_v26 = vmul.f32 %v3659_v54, %v3659_v54 }
 0x180   :  { %v1339_v14 = vpop.f32.mrf.mxu2  ;;  %v1367_v42 = vpop.f32.mrf.mxu0 }
 0x181   :  { %v1525_v28 = vadd.f32 %v1524_v0, %v3659_v54  ;;  %v1588_v11 = vrot.slane %v1580_v26, 4  ;;  %v1340_v8 = vadd.f32 %v1339_v14, %v1326_v38  ;;  %v2951_v38 = vld [vmem:[#allocation5 + $0x10] sm:$0xff] }
 0x182   :  { %v1381_v47 = vpop.f32.mrf.mxu1  ;;  %v2963_v0 = vld [vmem:[#allocation5 + $0x70] sm:$0xff]  ;;  %2024 = vmatpush.bf16.msrb.mxu0 %v2951_v38 }
 0x183   :  { %v1526_v55 = vrot.slane %v1525_v28, 2  ;;  %v1589_v5 = vadd.f32 %v1588_v11, %v1580_v26  ;;  %v1382_v62 = vadd.f32 %v1381_v47, %v1367_v42  ;;  %2034 = vmatpush.bf16.msrb.mxu1 %v2963_v0  ;;  %v2959_v38 = vld [vmem:[#allocation5 + $0x50] sm:$0xff] }
 0x184   :  { %v1353_v20 = vpop.f32.mrf.mxu3  ;;  %v2971_v0 = vld [vmem:[#allocation5 + $0xb0] sm:$0xff] }
 0x185   :  { %v1527_v35 = vadd.f32 %v1526_v55, %v1525_v28  ;;  %v1590_v58 = vrot.slane %v1589_v5, 2  ;;  %v3665_v63 = vadd.f32 %v1353_v20, %v1340_v8  ;;  %v2962_v20 = vld [vmem:[#allocation5 + $0x68] sm:$0xff] }
 0x186   :  { %2025 = vmatpush.bf16.msrb.mxu0 %v2950_v39 }
 0x187   :  { %v1528_v44 = vrot.slane %v1527_v35, 1  ;;  %v1591_v52 = vadd.f32 %v1590_v58, %v1589_v5  ;;  %v1548_v31 = vrot.slane %v3665_v63, 4  ;;  %v1584_v17 = vmul.f32 %v3665_v63, %v3665_v63  ;;  %2035 = vmatpush.bf16.msrb.mxu1 %v2962_v20 }
 0x188   :  { %v1393_v2 = vpop.f32.mrf.mxu2 }
 0x189   :  { %v1529_v37 = vadd.f32 %v1528_v44, %v1527_v35  ;;  %v1592_v32 = vrot.slane %v1591_v52, 1  ;;  %v1549_v10 = vadd.f32 %v1548_v31, %v3665_v63  ;;  %v1612_v48 = vrot.slane %v1584_v17, 4 }
 0x18a   :  { %v1394_v43 = vadd.f32 %v1393_v2, %v1380_v36  ;;  %v2949_v2 = vld [vmem:[#allocation5] sm:$0xff] }
 0x18b   :  { %v3672_v51 = vmul.f32 %v1529_v37, %v3243_v12  ;;  %v1593_v56 = vadd.f32 %v1592_v32, %v1591_v52  ;;  %v1550_v4 = vrot.slane %v1549_v10, 2  ;;  %v1613_v16 = vadd.f32 %v1612_v48, %v1584_v17  ;;  %2026 = vmatpush.bf16.msrb.mxu0 %v2949_v2 }
 0x18c   :  { %v1407_v9 = vpop.f32.mrf.mxu3 }
 0x18d   :  { %v1636_v27 = vmul.f32 %v1593_v56, %v3243_v12  ;;  %v1644_v41 = vmul.f32 %v3672_v51, %v3672_v51  ;;  %v1551_v1 = vadd.f32 %v1550_v4, %v1549_v10  ;;  %v1614_v19 = vrot.slane %v1613_v16, 2 }
 0x18e   :  { %v3677_v61 = vadd.f32 %v1407_v9, %v1394_v43  ;;  %v2961_v43 = vld [vmem:[#allocation5 + $0x60] sm:$0xff] }
 0x18f   :  { %v1652_v53 = vsub.f32 %v1636_v27, %v1644_v41  ;;  %v1552_v59 = vrot.slane %v1551_v1, 1  ;;  %v1615_v7 = vadd.f32 %v1614_v19, %v1613_v16  ;;  %2036 = vmatpush.bf16.msrb.mxu1 %v2961_v43 }
 0x190   :  { %v1530_v23 = vrot.slane %v3677_v61, 4  ;;  %v1581_v13 = vmul.f32 %v3677_v61, %v3677_v61  ;;  %v1395_v46 = vpop.f32.mrf.mxu2 }
 0x191   :  { %v1660_v50 = vmax.f32 %v1652_v53, 0.0  ;;  %v1553_v24 = vadd.f32 %v1552_v59, %v1551_v1  ;;  %v1616_v25 = vrot.slane %v1615_v7, 1  ;;  %v1396_v18 = vadd.f32 %v1395_v46, %v1382_v62  ;;  %v2960_v53 = vld [vmem:[#allocation5 + $0x58] sm:$0xff] }
 0x192   :  { %v1531_v57 = vadd.f32 %v1530_v23, %v3677_v61  ;;  %v1594_v3 = vrot.slane %v1581_v13, 4  ;;  %v2972_v59 = vld [vmem:[#allocation5 + $0xb8] sm:$0xff] }
 0x193   :  { %v3683_v29 = vadd.f32 1e-05, %v1660_v50  ;;  %v3686_v60 = vmul.f32 %v1553_v24, %v3243_v12  ;;  %v1617_v30 = vadd.f32 %v1616_v25, %v1615_v7  ;;  %2037 = vmatpush.bf16.msrb.mxu1 %v2960_v53  ;;  %2047 = vmatpush.bf16.msrb.mxu2 %v2972_v59 }
 0x194   :  { %v1532_v22 = vrot.slane %v1531_v57, 2  ;;  %v1595_v15 = vadd.f32 %v1594_v3, %v1581_v13  ;;  %v1409_v11 = vpop.f32.mrf.mxu3 }
 0x195   :  { %3011 = vrsqrt.f32 %v3683_v29  ;;  %v1648_v26 = vmul.f32 %v3686_v60, %v3686_v60  ;;  %v1640_v14 = vmul.f32 %v1617_v30, %v3243_v12  ;;  %v3692_v8 = vadd.f32 %v1409_v11, %v1396_v18 }
 0x196   :  { %v1533_v6 = vadd.f32 %v1532_v22, %v1531_v57  ;;  %v1596_v28 = vrot.slane %v1595_v15, 2  ;;  %v1421_v31 = vpop.f32.mrf.mxu0  ;;  %v3718_v22 = vld [vmem:[#allocation7] sm:$0xff]  ;;  %vm1690_vm12 = vweird.f32 %v3683_v29 }
 0x197   :  { %v1656_v55 = vsub.f32 %v1640_v14, %v1648_v26  ;;  %v1554_v33 = vrot.slane %v3692_v8, 4  ;;  %v1585_v35 = vmul.f32 %v3692_v8, %v3692_v8  ;;  %v1435_v17 = vpop.f32.mrf.mxu1  ;;  %2038 = vmatpush.bf16.msrb.mxu1 %v2959_v38  ;;  %2048 = vmatpush.bf16.msrb.mxu2 %v2971_v0 }
 0x198   :  { %v1534_v5 = vrot.slane %v1533_v6, 1  ;;  %v1597_v34 = vadd.f32 %v1596_v28, %v1595_v15  ;;  %v1436_v41 = vadd.f32 %v1435_v17, %v1421_v31  ;;  %v1772_v15 = vperm.slane %v3718_v22, 2  ;;  %v2958_v31 = vld [vmem:[#allocation5 + $0x48] sm:$0xff] }
 0x199   :  { %v1664_v58 = vmax.f32 %v1656_v55, 0.0  ;;  %v1555_v45 = vadd.f32 %v1554_v33, %v3692_v8  ;;  %v1618_v37 = vrot.slane %v1585_v35, 4  ;;  %v1668_v33 = vsub.f32 %v3659_v54, %v3672_v51  ;;  %v2970_v17 = vld [vmem:[#allocation5 + $0xa8] sm:$0xff] }
 0x19a   :  { %v1535_v44 = vadd.f32 %v1534_v5, %v1533_v6  ;;  %v1598_v52 = vrot.slane %v1597_v34, 1  ;;  %v1792_v5 = vperm.slane %v3718_v22, 3 }
 0x19b   :  { %v3697_v36 = vpop.eup %3011  ;;  %v3702_v10 = vadd.f32 1e-05, %v1664_v58  ;;  %v1556_v4 = vrot.slane %v1555_v45, 2  ;;  %v1619_v16 = vadd.f32 %v1618_v37, %v1585_v35  ;;  %2039 = vmatpush.bf16.msrb.mxu1 %v2958_v31  ;;  %2049 = vmatpush.bf16.msrb.mxu2 %v2970_v17 }
 0x19c   :  { %v1685_v32 = vmul.f32 %v3697_v36, %v3683_v29  ;;  %v3705_v48 = vmul.f32 %v1535_v44, %v3243_v12  ;;  %v1599_v56 = vadd.f32 %v1598_v52, %v1597_v34  ;;  %vm1691_vm11 = vweird.f32 %v3697_v36 }
 0x19d   :  { %3013 = vrsqrt.f32 %v3702_v10  ;;  %v1557_v1 = vadd.f32 %v1556_v4, %v1555_v45  ;;  %v1620_v19 = vrot.slane %v1619_v16, 2  ;;  %vm3731_vm13 = vmor %vm1690_vm12, %vm1691_vm11  ;;  %vm1730_vm15 = vweird.f32 %v3702_v10 }
 0x19e   :  { %v1686_v9 = vmul.f32 %v3697_v36, %v1685_v32  ;;  %v1645_v49 = vmul.f32 %v3705_v48, %v3705_v48  ;;  %v1637_v27 = vmul.f32 %v1599_v56, %v3243_v12  ;;  %v1423_v18 = vpop.f32.mrf.mxu0  ;;  %v1780_v32 = vperm.slane %v1772_v15, 2 }
 0x19f   :  { %v1558_v23 = vrot.slane %v1557_v1, 1  ;;  %v1621_v13 = vadd.f32 %v1620_v19, %v1619_v16  ;;  %v1437_v30 = vpop.f32.mrf.mxu1  ;;  %v1800_v16 = vperm.slane %v1792_v5, 3  ;;  %v2969_v19 = vld [vmem:[#allocation5 + $0xa0] sm:$0xff] }
 0x1a0   :  { %v1687_v42 = vmul.f32 0.5, %v1686_v9  ;;  %v1653_v7 = vsub.f32 %v1637_v27, %v1645_v49  ;;  %v1438_v20 = vadd.f32 %v1437_v30, %v1423_v18  ;;  %v1672_v49 = vsub.f32 %v3665_v63, %v3686_v60  ;;  %2050 = vmatpush.bf16.msrb.mxu2 %v2969_v19 }
 0x1a1   :  { %v1559_v62 = vadd.f32 %v1558_v23, %v1557_v1  ;;  %v1622_v46 = vrot.slane %v1621_v13, 1  ;;  %v2957_v1 = vld [vmem:[#allocation5 + $0x40] sm:$0xff] }
 0x1a2   :  { %v1449_v47 = vpop.f32.mrf.mxu2  ;;  %v1688_v50 = vsub.f32 1.5, %v1687_v42  ;;  %v1661_v24 = vmax.f32 %v1653_v7, 0.0  ;;  %2040 = vmatpush.bf16.msrb.mxu1 %v2957_v1 }
 0x1a3   :  { %v1450_v21 = vadd.f32 %v1449_v47, %v1436_v41  ;;  %v3715_v57 = vpop.eup %3013  ;;  %v3727_v6 = vmul.f32 %v1559_v62, %v3243_v12  ;;  %v1623_v11 = vadd.f32 %v1622_v46, %v1621_v13  ;;  %v2968_v46 = vld [vmem:[#allocation5 + $0x98] sm:$0xff] }
 0x1a4   :  { %v1689_v3 = vmul.f32 %v3697_v36, %v1688_v50  ;;  %v1725_v26 = vmul.f32 %v3715_v57, %v3702_v10  ;;  %v3724_v14 = vadd.f32 1e-05, %v1661_v24  ;;  %vm1731_vm14 = vweird.f32 %v3715_v57  ;;  %2051 = vmatpush.bf16.msrb.mxu2 %v2968_v46 }
 0x1a5   :  { %v1641_v35 = vmul.f32 %v1623_v11, %v3243_v12  ;;  %v1649_v58 = vmul.f32 %v3727_v6, %v3727_v6  ;;  %vm1732_vm0 = vmor %vm1730_vm15, %vm1731_vm14 }
 0x1a6   :  { %v1463_v40 = vpop.f32.mrf.mxu3  ;;  %v1693_v34 = vsel %vm3731_vm13, %v3697_v36, %v1689_v3  ;;  %v1726_v39 = vmul.f32 %v3715_v57, %v1725_v26  ;;  %3015 = vrsqrt.f32 %v3724_v14  ;;  %vm1700_vm2 = vweird.f32 %v3724_v14 }
 0x1a7   :  { %v3713_v25 = vadd.f32 %v1463_v40, %v1450_v21  ;;  %v1764_v2 = vmul.f32 %v1693_v34, %v1668_v33  ;;  %v1657_v43 = vsub.f32 %v1641_v35, %v1649_v58  ;;  %v2967_v34 = vld [vmem:[#allocation5 + $0x90] sm:$0xff] }
 0x1a8   :  { %v1727_v45 = vmul.f32 0.5, %v1726_v39  ;;  %2052 = vmatpush.bf16.msrb.mxu2 %v2967_v34  ;;  %v2978_v34 = vld [vmem:[#allocation5 + $0xe8] sm:$0xff] }
 0x1a9   :  { %v1536_v55 = vrot.slane %v3713_v25, 4  ;;  %v1582_v29 = vmul.f32 %v3713_v25, %v3713_v25  ;;  %v1665_v27 = vmax.f32 %v1657_v43, 0.0  ;;  %v1784_v23 = vmul.f32 %v1780_v32, %v1764_v2 }
 0x1aa   :  { %v1451_v52 = vpop.f32.mrf.mxu2  ;;  %v1728_v54 = vsub.f32 1.5, %v1727_v45 }
 0x1ab   :  { %v1537_v44 = vadd.f32 %v1536_v55, %v3713_v25  ;;  %v1600_v36 = vrot.slane %v1582_v29, 4  ;;  %v1452_v37 = vadd.f32 %v1451_v52, %v1438_v20  ;;  %v3764_v60 = vadd.f32 1e-05, %v1665_v27 }
 0x1ac   :  { %v3756_v42 = vpop.eup %3015  ;;  %v1729_v47 = vmul.f32 %v3715_v57, %v1728_v54  ;;  %v1804_v26 = vadd.f32 %v1800_v16, %v1784_v23 }
 0x1ad   :  { %v1538_v56 = vrot.slane %v1537_v44, 2  ;;  %v1601_v51 = vadd.f32 %v1600_v36, %v1582_v29  ;;  %v1695_v63 = vmul.f32 %v3756_v42, %v3724_v14  ;;  %3017 = vrsqrt.f32 %v3764_v60 }
 0x1ae   :  { %v1465_v4 = vpop.f32.mrf.mxu3  ;;  %v1733_v13 = vsel %vm1732_vm0, %v3715_v57, %v1729_v47  ;;  %vm1701_vm1 = vweird.f32 %v3756_v42  ;;  %v1812_v31 = vmax.f32 %v1804_v26, 0.0  ;;  %vm1740_vm5 = vweird.f32 %v3764_v60 }
 0x1af   :  { %v3751_v9 = vadd.f32 %v1465_v4, %v1452_v37  ;;  %v1539_v41 = vadd.f32 %v1538_v56, %v1537_v44  ;;  %v1602_v53 = vrot.slane %v1601_v51, 2  ;;  %v1768_v24 = vmul.f32 %v1733_v13, %v1672_v49  ;;  %v2966_v56 = vld [vmem:[#allocation5 + $0x88] sm:$0xff]  ;;  %vm3785_vm3 = vmor %vm1700_vm2, %vm1701_vm1 }
 0x1b0   :  { %v1696_v62 = vmul.f32 %v3756_v42, %v1695_v63  ;;  %2053 = vmatpush.bf16.msrb.mxu2 %v2966_v56  ;;  %v2965_v63 = vld [vmem:[#allocation5 + $0x80] sm:$0xff] }
 0x1b1   :  { %v1560_v59 = vrot.slane %v3751_v9, 4  ;;  %v1586_v7 = vmul.f32 %v3751_v9, %v3751_v9  ;;  %v1540_v10 = vrot.slane %v1539_v41, 1  ;;  %v1603_v21 = vadd.f32 %v1602_v53, %v1601_v51 }
 0x1b2   :  { %v1697_v38 = vmul.f32 0.5, %v1696_v62  ;;  %v1788_v0 = vmul.f32 %v1780_v32, %v1768_v24  ;;  %v1669_v53 = vsub.f32 %v3677_v61, %v3705_v48  ;;  %v1793_v24 = vperm.slane %v3718_v22, 7 }
 0x1b3   :  { %v1561_v40 = vadd.f32 %v1560_v59, %v3751_v9  ;;  %v1624_v50 = vrot.slane %v1586_v7, 4  ;;  %v1541_v3 = vadd.f32 %v1540_v10, %v1539_v41  ;;  %v1604_v18 = vrot.slane %v1603_v21, 1  ;;  %v3018_v35 = vpop.eup %3017  ;;  %v2980_v10 = vld [vmem:[#allocation5 + $0xf8] sm:$0xff] }
 0x1b4   :  { %v1698_v29 = vsub.f32 1.5, %v1697_v38  ;;  %v1808_v5 = vadd.f32 %v1800_v16, %v1788_v0  ;;  %v1735_v36 = vmul.f32 %v3018_v35, %v3764_v60  ;;  %v1773_v41 = vperm.slane %v3718_v22, 6  ;;  %2054 = vmatpush.bf16.msrb.mxu2 %v2965_v63  ;;  %2061 = vmatpush.bf16.msrb.mxu3 %v2980_v10 }
 0x1b5   :  { %v1562_v30 = vrot.slane %v1561_v40, 2  ;;  %v1625_v15 = vadd.f32 %v1624_v50, %v1586_v7  ;;  %v3771_v57 = vmul.f32 %v1541_v3, %v3243_v12  ;;  %v1605_v28 = vadd.f32 %v1604_v18, %v1603_v21 }
 0x1b6   :  { %v1477_v44 = vpop.f32.mrf.mxu0  ;;  %v1816_v17 = vmax.f32 %v1808_v5, 0.0  ;;  %v1699_v45 = vmul.f32 %v3756_v42, %v1698_v29  ;;  %v1736_v4 = vmul.f32 %v3018_v35, %v1735_v36  ;;  %vm1741_vm4 = vweird.f32 %v3018_v35 }
 0x1b7   :  { %v1563_v11 = vadd.f32 %v1562_v30, %v1561_v40  ;;  %v1626_v55 = vrot.slane %v1625_v15, 2  ;;  %v1638_v39 = vmul.f32 %v1605_v28, %v3243_v12  ;;  %v1646_v20 = vmul.f32 %v3771_v57, %v3771_v57  ;;  %v1491_v52 = vpop.f32.mrf.mxu1  ;;  %vm1742_vm6 = vmor %vm1740_vm5, %vm1741_vm4  ;;  %v2979_v30 = vld [vmem:[#allocation5 + $0xf0] sm:$0xff] }
 0x1b8   :  { %v1820_v43 = vpack.c.bf16 %v1816_v17, %v1812_v31  ;;  %v1492_v27 = vadd.f32 %v1491_v52, %v1477_v44  ;;  %v1703_v14 = vsel %vm3785_vm3, %v3756_v42, %v1699_v45  ;;  %v1737_v1 = vmul.f32 0.5, %v1736_v4  ;;  %2062 = vmatpush.bf16.msrb.mxu3 %v2979_v30 }
 0x1b9   :  { %v1564_v33 = vrot.slane %v1563_v11, 1  ;;  %v1627_v58 = vadd.f32 %v1626_v55, %v1625_v15  ;;  %v1654_v37 = vsub.f32 %v1638_v39, %v1646_v20  ;;  %v1765_v42 = vmul.f32 %v1703_v14, %v1669_v53 }
 0x1ba   :  { %2027 = vmatmul.bf16.vlgmr.msrb.gmra.mxu0 %v1820_v43  ;;  %v1738_v23 = vsub.f32 1.5, %v1737_v1  ;;  %v1781_v50 = vperm.slane %v1773_v41, 2  ;;  %v1673_v48 = vsub.f32 %v3692_v8, %v3727_v6  ;;  %v1801_v28 = vperm.slane %v1793_v24, 3  ;;  %v2977_v43 = vld [vmem:[#allocation5 + $0xe0] sm:$0xff] }
 0x1bb   :  { %v1565_v32 = vadd.f32 %v1564_v33, %v1563_v11  ;;  %v1628_v2 = vrot.slane %v1627_v58, 1  ;;  %v1662_v16 = vmax.f32 %v1654_v37, 0.0 }
 0x1bc   :  { %v1739_v62 = vmul.f32 %v3018_v35, %v1738_v23  ;;  %v1785_v60 = vmul.f32 %v1781_v50, %v1765_v42  ;;  %2063 = vmatpush.bf16.msrb.mxu3 %v2978_v34  ;;  %v2976_v23 = vld [vmem:[#allocation5 + $0xd8] sm:$0xff] }
 0x1bd   :  { %v3781_v54 = vmul.f32 %v1565_v32, %v3243_v12  ;;  %v1629_v49 = vadd.f32 %v1628_v2, %v1627_v58  ;;  %v3793_v19 = vadd.f32 1e-05, %v1662_v16  ;;  %v3817_v32 = vld [vmem:[#allocation7 + $0x8] sm:$0xff] }
 0x1be   :  { %v1479_v3 = vpop.f32.mrf.mxu0  ;;  %v1743_v15 = vsel %vm1742_vm6, %v3018_v35, %v1739_v62  ;;  %v1805_v52 = vadd.f32 %v1801_v28, %v1785_v60  ;;  %v1774_v2 = vperm.slane %v3817_v32, 2 }
 0x1bf   :  { %v1650_v47 = vmul.f32 %v3781_v54, %v3781_v54  ;;  %v1642_v59 = vmul.f32 %v1629_v49, %v3243_v12  ;;  %3019 = vrsqrt.f32 %v3793_v19  ;;  %v1493_v18 = vpop.f32.mrf.mxu1  ;;  %v1769_v0 = vmul.f32 %v1743_v15, %v1673_v48 }
 0x1c0   :  { %v1494_v55 = vadd.f32 %v1493_v18, %v1479_v3  ;;  %v1813_v41 = vmax.f32 %v1805_v52, 0.0  ;;  %2064 = vmatpush.bf16.msrb.mxu3 %v2977_v43  ;;  %vm1710_vm8 = vweird.f32 %v3793_v19  ;;  %v1794_v3 = vperm.slane %v3817_v32, 3 }
 0x1c1   :  { %v1658_v21 = vsub.f32 %v1642_v59, %v1650_v47  ;;  %v1789_v35 = vmul.f32 %v1781_v50, %v1769_v0 }
 0x1c2   :  { %v1505_v7 = vpop.f32.mrf.mxu2 }
 0x1c3   :  { %v1506_v13 = vadd.f32 %v1505_v7, %v1492_v27  ;;  %v1666_v46 = vmax.f32 %v1658_v21, 0.0  ;;  %v1809_v36 = vadd.f32 %v1801_v28, %v1789_v35  ;;  %v2974_v28 = vld [vmem:[#allocation5 + $0xc8] sm:$0xff] }
 0x1c4   :  { %2065 = vmatpush.bf16.msrb.mxu3 %v2976_v23 }
 0x1c5   :  { %v3810_v26 = vadd.f32 1e-05, %v1666_v46  ;;  %v3020_v11 = vpop.eup %3019  ;;  %v1817_v14 = vmax.f32 %v1809_v36, 0.0 }
 0x1c6   :  { %v1519_v40 = vpop.f32.mrf.mxu3  ;;  %v1705_v29 = vmul.f32 %v3020_v11, %v3793_v19  ;;  %vm1711_vm7 = vweird.f32 %v3020_v11 }
 0x1c7   :  { %v3803_v61 = vadd.f32 %v1519_v40, %v1506_v13  ;;  %3021 = vrsqrt.f32 %v3810_v26  ;;  %v1821_v10 = vpack.c.bf16 %v1817_v14, %v1813_v41  ;;  %vm1712_vm9 = vmor %vm1710_vm8, %vm1711_vm7  ;;  %v1670_v40 = vsub.f32 %v3713_v25, %v3771_v57 }
 0x1c8   :  { %v1706_v58 = vmul.f32 %v3020_v11, %v1705_v29  ;;  %vm1750_vm11 = vweird.f32 %v3810_v26 }
 0x1c9   :  { %v1542_v38 = vrot.slane %v3803_v61, 4  ;;  %v1583_v22 = vmul.f32 %v3803_v61, %v3803_v61  ;;  %2041 = vmatmul.bf16.vlgmr.msrb.gmra.mxu1 %v1821_v10 }
 0x1ca   :  { %v1507_v5 = vpop.f32.mrf.mxu2  ;;  %v1707_v37 = vmul.f32 0.5, %v1706_v58 }
 0x1cb   :  { %v1543_v8 = vadd.f32 %v1542_v38, %v3803_v61  ;;  %v1606_v6 = vrot.slane %v1583_v22, 4  ;;  %v1508_v33 = vadd.f32 %v1507_v5, %v1494_v55  ;;  %v1782_v38 = vperm.slane %v1774_v2, 2 }
 0x1cc   :  { %v1708_v27 = vsub.f32 1.5, %v1707_v37 }
 0x1cd   :  { %v1544_v39 = vrot.slane %v1543_v8, 2  ;;  %v1607_v20 = vadd.f32 %v1606_v6, %v1583_v22  ;;  %v3022_v49 = vpop.eup %3021  ;;  %v2975_v22 = vld [vmem:[#allocation5 + $0xd0] sm:$0xff]  ;;  %v1674_v6 = vsub.f32 %v3751_v9, %v3781_v54 }
 0x1ce   :  { %v1521_v44 = vpop.f32.mrf.mxu3  ;;  %v1745_v1 = vmul.f32 %v3022_v49, %v3810_v26  ;;  %v1709_v59 = vmul.f32 %v3020_v11, %v1708_v27  ;;  %vm1751_vm10 = vweird.f32 %v3022_v49  ;;  %2066 = vmatpush.bf16.msrb.mxu3 %v2975_v22 }
 0x1cf   :  { %v1545_v31 = vadd.f32 %v1544_v39, %v1543_v8  ;;  %v1608_v17 = vrot.slane %v1607_v20, 2  ;;  %v3815_v45 = vadd.f32 %v1521_v44, %v1508_v33  ;;  %v1802_v8 = vperm.slane %v1794_v3, 3  ;;  %vm1752_vm12 = vmor %vm1750_vm11, %vm1751_vm10  ;;  %v2973_v44 = vld [vmem:[#allocation5 + $0xc0] sm:$0xff] }
 0x1d0   :  { %v1746_v13 = vmul.f32 %v3022_v49, %v1745_v1  ;;  %v1713_v19 = vsel %vm1712_vm9, %v3020_v11, %v1709_v59 }
 0x1d1   :  { %v1546_v56 = vrot.slane %v1545_v31, 1  ;;  %v1609_v4 = vadd.f32 %v1608_v17, %v1607_v20  ;;  %v1566_v16 = vrot.slane %v3815_v45, 4  ;;  %v1587_v51 = vmul.f32 %v3815_v45, %v3815_v45 }
 0x1d2   :  { %v1747_v62 = vmul.f32 0.5, %v1746_v13  ;;  %v1766_v18 = vmul.f32 %v1713_v19, %v1670_v40  ;;  %2067 = vmatpush.bf16.msrb.mxu3 %v2974_v28  ;;  %v1795_v13 = vperm.slane %v3817_v32, 7 }
 0x1d3   :  { %v1547_v47 = vadd.f32 %v1546_v56, %v1545_v31  ;;  %v1610_v53 = vrot.slane %v1609_v4, 1  ;;  %v1567_v7 = vadd.f32 %v1566_v16, %v3815_v45  ;;  %v1630_v63 = vrot.slane %v1587_v51, 4 }
 0x1d4   :  { %v1748_v0 = vsub.f32 1.5, %v1747_v62  ;;  %v1786_v34 = vmul.f32 %v1782_v38, %v1766_v18 }
 0x1d5   :  { %v3827_v42 = vmul.f32 %v1547_v47, %v3243_v12  ;;  %v1611_v21 = vadd.f32 %v1610_v53, %v1609_v4  ;;  %v1568_v50 = vrot.slane %v1567_v7, 2  ;;  %v1631_v24 = vadd.f32 %v1630_v63, %v1587_v51 }
 0x1d6   :  { %v1749_v11 = vmul.f32 %v3022_v49, %v1748_v0  ;;  %v1806_v17 = vadd.f32 %v1802_v8, %v1786_v34  ;;  %2068 = vmatpush.bf16.msrb.mxu3 %v2973_v44  ;;  %v1775_v47 = vperm.slane %v3817_v32, 6  ;;  %v2992_v32 = vld [vmem:[%s3877_s5] ss:$0 sm:$0xff]  ;;  %s3169_s5 = smov [#allocation8]  }
 0x1d7   :  { %v1639_v48 = vmul.f32 %v1611_v21, %v3243_v12  ;;  %v1647_v46 = vmul.f32 %v3827_v42, %v3827_v42  ;;  %v1569_v30 = vadd.f32 %v1568_v50, %v1567_v7  ;;  %v1632_v15 = vrot.slane %v1631_v24, 2  ;;  %s2144_s21 = sshll.u32 %s3169_s5, 4  ;;  %s2145_s21 = int_to_ptr.vmem [resolvable:$true] %s2144_s21 }
 0x1d8   :  { %v1753_v39 = vsel %vm1752_vm12, %v3022_v49, %v1749_v11  ;;  %v1814_v37 = vmax.f32 %v1806_v17, 0.0  ;;  %v1671_v7 = vsub.f32 %v3803_v61, %v3827_v42  ;;  %v1783_v23 = vperm.slane %v1775_v47, 2 }
 0x1d9   :  { %v1655_v25 = vsub.f32 %v1639_v48, %v1647_v46  ;;  %v1570_v57 = vrot.slane %v1569_v30, 1  ;;  %v1633_v60 = vadd.f32 %v1632_v15, %v1631_v24  ;;  %v1770_v33 = vmul.f32 %v1753_v39, %v1674_v6 }
 0x1da   :  { %v1803_v24 = vperm.slane %v1795_v13, 3 }
 0x1db   :  { %v1663_v55 = vmax.f32 %v1655_v25, 0.0  ;;  %v1571_v29 = vadd.f32 %v1570_v57, %v1569_v30  ;;  %v1634_v5 = vrot.slane %v1633_v60, 1  ;;  %v1790_v31 = vmul.f32 %v1782_v38, %v1770_v33 }
 0x1dd   :  { %v1679_v20 = vadd.f32 1e-05, %v1663_v55  ;;  %v1579_v35 = vmul.f32 %v1571_v29, %v3243_v12  ;;  %v1635_v58 = vadd.f32 %v1634_v5, %v1633_v60  ;;  %v1810_v9 = vadd.f32 %v1802_v8, %v1790_v31 }
 0x1df   :  { %3023 = vrsqrt.f32 %v1679_v20  ;;  %v1643_v26 = vmul.f32 %v1635_v58, %v3243_v12  ;;  %v1651_v52 = vmul.f32 %v1579_v35, %v1579_v35  ;;  %v1818_v2 = vmax.f32 %v1810_v9, 0.0 }
 0x1e0   :  { %vm1720_vm14 = vweird.f32 %v1679_v20  ;;  %v1675_v19 = vsub.f32 %v3815_v45, %v1579_v35 }
 0x1e1   :  { %v1659_v36 = vsub.f32 %v1643_v26, %v1651_v52  ;;  %v1822_v16 = vpack.c.bf16 %v1818_v2, %v1814_v37 }
 0x1e3   :  { %v1667_v54 = vmax.f32 %v1659_v36, 0.0  ;;  %2055 = vmatmul.bf16.vlgmr.msrb.gmra.mxu2 %v1822_v16 }
 0x1e5   :  { %v3024_v43 = vpop.eup %3023  ;;  %v1683_v4 = vadd.f32 1e-05, %v1667_v54 }
 0x1e6   :  { %v1715_v56 = vmul.f32 %v3024_v43, %v1679_v20  ;;  %vm1721_vm13 = vweird.f32 %v3024_v43 }
 0x1e7   :  { %3025 = vrsqrt.f32 %v1683_v4  ;;  %vm1722_vm15 = vmor %vm1720_vm14, %vm1721_vm13  ;;  %vm1760_vm1 = vweird.f32 %v1683_v4 }
 0x1e8   :  { %v1716_v51 = vmul.f32 %v3024_v43, %v1715_v56 }
 0x1ea   :  { %v1717_v49 = vmul.f32 0.5, %v1716_v51 }
 0x1ec   :  { %v1718_v27 = vsub.f32 1.5, %v1717_v49 }
 0x1ed   :  { %v3026_v41 = vpop.eup %3025 }
 0x1ee   :  { %v1719_v14 = vmul.f32 %v3024_v43, %v1718_v27  ;;  %v1755_v1 = vmul.f32 %v3026_v41, %v1683_v4  ;;  %vm1761_vm0 = vweird.f32 %v3026_v41 }
 0x1ef   :  { %vm1762_vm2 = vmor %vm1760_vm1, %vm1761_vm0 }
 0x1f0   :  { %v1723_v53 = vsel %vm1722_vm15, %v3024_v43, %v1719_v14  ;;  %v1756_v59 = vmul.f32 %v3026_v41, %v1755_v1 }
 0x1f1   :  { %v1767_v10 = vmul.f32 %v1723_v53, %v1671_v7 }
 0x1f2   :  { %v1757_v63 = vmul.f32 0.5, %v1756_v59 }
 0x1f3   :  { %v1787_v50 = vmul.f32 %v1783_v23, %v1767_v10 }
 0x1f4   :  { %v1758_v21 = vsub.f32 1.5, %v1757_v63 }
 0x1f5   :  { %v1807_v3 = vadd.f32 %v1803_v24, %v1787_v50 }
 0x1f6   :  { %v1759_v40 = vmul.f32 %v3026_v41, %v1758_v21 }
 0x1f7   :  { %v1815_v61 = vmax.f32 %v1807_v3, 0.0 }
 0x1f8   :  { %v1763_v62 = vsel %vm1762_vm2, %v3026_v41, %v1759_v40 }
 0x1f9   :  { %v1771_v48 = vmul.f32 %v1763_v62, %v1675_v19 }
 0x1fb   :  { %v1791_v46 = vmul.f32 %v1783_v23, %v1771_v48 }
 0x1fd   :  { %v1811_v18 = vadd.f32 %v1803_v24, %v1791_v46 }
 0x1ff   :  { %v1819_v42 = vmax.f32 %v1811_v18, 0.0 }
 0x201   :  { %v1823_v30 = vpack.c.bf16 %v1819_v42, %v1815_v61 }
 0x203   :  { %2069 = vmatmul.bf16.vlgmr.msrb.gmra.mxu3 %v1823_v30 }
 0x237   :  { %v2028_v15 = vpop.f32.mrf.mxu0 }
 0x238   :  { %v2029_v45 = vadd.f32 %v2992_v32, %v2028_v15 }
 0x23f   :  { %v2030_v57 = vpop.f32.mrf.mxu0 }
 0x240   :  { %v2031_v55 = vadd.f32 %v2992_v32, %v2030_v57 }
 0x246   :  { %v2042_v38 = vpop.f32.mrf.mxu1 }
 0x247   :  { %v2043_v0 = vadd.f32 %v2042_v38, %v2029_v45 }
 0x24e   :  { %v2044_v11 = vpop.f32.mrf.mxu1 }
 0x24f   :  { %v2045_v5 = vadd.f32 %v2044_v11, %v2031_v55 }
 0x266   :  { %v2056_v22 = vpop.f32.mrf.mxu2 }
 0x267   :  { %v2057_v25 = vadd.f32 %v2056_v22, %v2043_v0 }
 0x26e   :  { %v2058_v29 = vpop.f32.mrf.mxu2 }
 0x26f   :  { %v2059_v20 = vadd.f32 %v2058_v29, %v2045_v5 }
 0x286   :  { %v2070_v60 = vpop.f32.mrf.mxu3 }
 0x287   :  { %v3848_v28 = vadd.f32 %v2070_v60, %v2057_v25 }
 0x289   :  { %v2075_v8 = vrot.slane %v3848_v28, 4  ;;  %v2089_v6 = vmul.f32 %v3848_v28, %v3848_v28 }
 0x28b   :  { %v2076_v34 = vadd.f32 %v2075_v8, %v3848_v28  ;;  %v2091_v39 = vrot.slane %v2089_v6, 4 }
 0x28d   :  { %v2077_v33 = vrot.slane %v2076_v34, 2  ;;  %v2092_v35 = vadd.f32 %v2091_v39, %v2089_v6 }
 0x28e   :  { %v2072_v58 = vpop.f32.mrf.mxu3 }
 0x28f   :  { %v2078_v44 = vadd.f32 %v2077_v33, %v2076_v34  ;;  %v2093_v26 = vrot.slane %v2092_v35, 2  ;;  %v3854_v52 = vadd.f32 %v2072_v58, %v2059_v20 }
 0x291   :  { %v2079_v31 = vrot.slane %v2078_v44, 1  ;;  %v2094_v17 = vadd.f32 %v2093_v26, %v2092_v35  ;;  %v2081_v36 = vrot.slane %v3854_v52, 4  ;;  %v2090_v9 = vmul.f32 %v3854_v52, %v3854_v52 }
 0x293   :  { %v2095_v54 = vrot.slane %v2094_v17, 1  ;;  %v2082_v37 = vadd.f32 %v2081_v36, %v3854_v52  ;;  %v2097_v2 = vrot.slane %v2090_v9, 4  ;;  %v2080_v43 = vadd.f32 %v2079_v31, %v2078_v44 }
 0x295   :  { %v2096_v56 = vadd.f32 %v2095_v54, %v2094_v17  ;;  %v2083_v4 = vrot.slane %v2082_v37, 2  ;;  %v2098_v16 = vadd.f32 %v2097_v2, %v2090_v9  ;;  %v2087_v51 = vmul.f32 %v2080_v43, %v3243_v12 }
 0x297   :  { %v2084_v49 = vadd.f32 %v2083_v4, %v2082_v37  ;;  %v2099_v27 = vrot.slane %v2098_v16, 2  ;;  %v2103_v41 = vmul.f32 %v2096_v56, %v3243_v12  ;;  %v2105_v14 = vmul.f32 %v2087_v51, %v2087_v51 }
 0x298   :  { %v2113_v30 = vsub.f32 %v3848_v28, %v2087_v51 }
 0x299   :  { %v2085_v1 = vrot.slane %v2084_v49, 1  ;;  %v2100_v47 = vadd.f32 %v2099_v27, %v2098_v16  ;;  %v2107_v53 = vsub.f32 %v2103_v41, %v2105_v14 }
 0x29b   :  { %v2101_v59 = vrot.slane %v2100_v47, 1  ;;  %v2109_v7 = vmax.f32 %v2107_v53, 0.0  ;;  %v2086_v63 = vadd.f32 %v2085_v1, %v2084_v49 }
 0x29d   :  { %v2102_v10 = vadd.f32 %v2101_v59, %v2100_v47  ;;  %v2111_v23 = vmul.f32 1.1428572, %v2109_v7  ;;  %v2088_v13 = vmul.f32 %v2086_v63, %v3243_v12 }
 0x29f   :  { %3027 = vrsqrt.f32 %v2111_v23  ;;  %v2104_v21 = vmul.f32 %v2102_v10, %v3243_v12  ;;  %v2106_v40 = vmul.f32 %v2088_v13, %v2088_v13  ;;  %vm2121_vm4 = vweird.f32 %v2111_v23 }
 0x2a0   :  { %v2114_v25 = vsub.f32 %v3854_v52, %v2088_v13 }
 0x2a1   :  { %v2108_v19 = vsub.f32 %v2104_v21, %v2106_v40 }
 0x2a3   :  { %v2110_v50 = vmax.f32 %v2108_v19, 0.0 }
 0x2a5   :  { %v3028_v24 = vpop.eup %3027  ;;  %v2112_v62 = vmul.f32 1.1428572, %v2110_v50 }
 0x2a6   :  { %v2116_v48 = vmul.f32 %v3028_v24, %v2111_v23  ;;  %vm2122_vm3 = vweird.f32 %v3028_v24 }
 0x2a7   :  { %3029 = vrsqrt.f32 %v2112_v62  ;;  %vm2123_vm5 = vmor %vm2121_vm4, %vm2122_vm3  ;;  %vm2131_vm7 = vweird.f32 %v2112_v62 }
 0x2a8   :  { %v2117_v46 = vmul.f32 %v3028_v24, %v2116_v48 }
 0x2aa   :  { %v2118_v3 = vmul.f32 0.5, %v2117_v46 }
 0x2ac   :  { %v2119_v18 = vsub.f32 1.5, %v2118_v3 }
 0x2ad   :  { %v3030_v61 = vpop.eup %3029 }
 0x2ae   :  { %v2120_v42 = vmul.f32 %v3028_v24, %v2119_v18  ;;  %v2126_v12 = vmul.f32 %v3030_v61, %v2112_v62  ;;  %vm2132_vm6 = vweird.f32 %v3030_v61 }
 0x2af   :  { %vm2133_vm8 = vmor %vm2131_vm7, %vm2132_vm6 }
 0x2b0   :  { %v2124_v15 = vsel %vm2123_vm5, %v3028_v24, %v2120_v42  ;;  %v2127_v32 = vmul.f32 %v3030_v61, %v2126_v12 }
 0x2b1   :  { %v2135_v38 = vmul.f32 %v2124_v15, %v2113_v30 }
 0x2b2   :  { %v2128_v22 = vmul.f32 0.5, %v2127_v32 }
 0x2b3   :  { %2137 = vst [vmem:[#allocation8] sm:$0xff] %v2135_v38 }
 0x2b4   :  { %2149 = dma.vmem_to_hbm [thread:$0]  %s2145_s21, 128, %s2147_s24, [#allocation4]   ;;  %v2129_v45 = vsub.f32 1.5, %v2128_v22 }
 0x2b6   :  { %v2130_v0 = vmul.f32 %v3030_v61, %v2129_v45 }
 0x2b8   :  { %v2134_v57 = vsel %vm2133_vm8, %v3030_v61, %v2130_v0 }
 0x2b9   :  { %v2136_v60 = vmul.f32 %v2134_v57, %v2114_v25 }
 0x2bb   :  { %2138 = vst [vmem:[#allocation9] sm:$0xff] %v2136_v60 }
 0x2bc   :  { %2160 = dma.vmem_to_hbm [thread:$0]  %s2156_s26, 128, %s2158_s28, [#allocation10]  }
 0x2bd   :  { %3157 = dma.done.wait [#allocation4], 128  }
 0x2be   :  { %3158 = vsyncadd [#allocation4], 4294967168 }
 0x2bf   :  { %3159 = dma.done.wait [#allocation10], 128  }
 0x2c0   :  { %3160 = vsyncadd [#allocation10], 4294967168 }
 0x2c1   :  { %2169 = vsyncpa [#allocation3], 1 }
 0x2c2   :  { %2170 = vsyncpa [#allocation6], 1 }
 0x2c3   :  { %2171 = vsyncpa [#allocation4], 1 }
 0x2c4   :  { %2172 = vsyncpa [#allocation10], 1 }

</bundles_post_ra>
